<compile_context>
chip_gen: v5e
topology: v5e:2x2
jax: 0.10.0
libtpu: 0.0.40
codegen_flags: <defaults>
</compile_context>

<pallas_src>
import numpy as np
import jax
import jax.numpy as jnp
from jax.experimental import pallas as pl
from jax.experimental.pallas import tpu as pltpu

HIDDEN = 512  # fixed by the module definition


def _round_up(x, m):
    return ((x + m - 1) // m) * m


def _choose_m_tile(M):
    """MXU-friendly row tile (multiple of 128, <= 512) and padded row count."""
    Mpad = _round_up(max(M, 1), 128)
    tm = min(512, Mpad)
    # v7x megacore: prefer >= 2 row tiles so the "parallel" grid axis shards across both
    # TensorCores (no effect on single-TC v5e/v6e other than a still-pipelined grid).
    if Mpad == tm and Mpad >= 256:
        tm = _round_up(Mpad // 2, 128)
    Mpad = _round_up(Mpad, tm)
    return tm, Mpad


# ---------------------------------------------------------------------------
# Pallas kernel: one grid step == one tile of (tm) rows taken from the flattened
# (num_clips * batch) row dimension.  All three Linear layers are fused.
# ---------------------------------------------------------------------------
def _mlp_rows_kernel(x_ref, w1_ref, b1_ref, w2_ref, b2_ref, w3_ref, b3_ref, o_ref):
    x = x_ref[...].astype(jnp.bfloat16)                                   # cast in VMEM (no HBM pre-pass)
    h = jnp.dot(x, w1_ref[...], preferred_element_type=jnp.float32)       # Linear(D, 512)
    h = jnp.maximum(h + b1_ref[...], 0.0).astype(jnp.bfloat16)            # bias + ReLU (f32), bf16 for MXU
    h = jnp.dot(h, w2_ref[...], preferred_element_type=jnp.float32)       # Linear(512, 512)
    h = jnp.maximum(h + b2_ref[...], 0.0).astype(jnp.bfloat16)
    y = jnp.dot(h, w3_ref[...], preferred_element_type=jnp.float32)       # Linear(512, Cpad)
    # TODO(synk): nn.Dropout(p=0.6) after the last Linear is identity at inference.
    o_ref[...] = y + b3_ref[...]                                          # per-row logits (f32, lane-dense)


# ---------------------------------------------------------------------------
# Parameter init (mirrors torch.nn.Linear default uniform init, stored as (in, out))
# ---------------------------------------------------------------------------
def init_params(key, num_input, num_classes, hidden=HIDDEN):
    def linear(k, fan_in, fan_out):
        kw, kb = jax.random.split(k)
        bound = 1.0 / np.sqrt(fan_in)
        w = jax.random.uniform(kw, (fan_in, fan_out), jnp.float32, -bound, bound)
        b = jax.random.uniform(kb, (fan_out,), jnp.float32, -bound, bound)
        return w, b

    k1, k2, k3 = jax.random.split(key, 3)
    w1, b1 = linear(k1, num_input, hidden)
    w2, b2 = linear(k2, hidden, hidden)
    w3, b3 = linear(k3, hidden, num_classes)
    return {"w1": w1, "b1": b1, "w2": w2, "b2": b2, "w3": w3, "b3": b3}


def prepare_params(params):
    """One-time weight prep (bf16 cast + lane padding), hoisted out of the forward."""
    H = params["w1"].shape[1]
    C = params["w3"].shape[1]
    Cpad = _round_up(C, 128)
    return {
        "w1": params["w1"].astype(jnp.bfloat16),
        "b1": params["b1"].reshape(1, H).astype(jnp.float32),
        "w2": params["w2"].astype(jnp.bfloat16),
        "b2": params["b2"].reshape(1, H).astype(jnp.float32),
        "w3": jnp.pad(params["w3"], ((0, 0), (0, Cpad - C))).astype(jnp.bfloat16),
        "b3": jnp.pad(params["b3"], (0, Cpad - C)).reshape(1, Cpad).astype(jnp.float32),
        "num_classes": C,
    }


# ---------------------------------------------------------------------------
# Forward (== MLP_late_fusion.forward): returns (mean-over-clips logits, {})
# ---------------------------------------------------------------------------
def mlp_late_fusion_forward(x, prepared):
    NC, B, D = x.shape
    H = prepared["w1"].shape[1]
    Cpad = prepared["w3"].shape[1]
    C = prepared["num_classes"]

    M = NC * B
    tm, Mpad = _choose_m_tile(M)
    nm = Mpad // tm

    # Flatten clips into the matmul M dimension; pad rows to the tile size (padded rows
    # are zero and are sliced away before the clip-mean).
    xr = x.reshape(M, D)
    if Mpad != M:
        xr = jnp.pad(xr, ((0, Mpad - M), (0, 0)))

    weight_bytes = (D * H + H * H + H * Cpad) * 2 + (2 * H + Cpad) * 4
    flops = 2 * Mpad * (D * H + H * H + H * Cpad)
    bytes_accessed = Mpad * D * 4 + weight_bytes + Mpad * Cpad * 4

    # VMEM budget: double-buffered x / out tiles + resident weights + activation slack.
    vmem_needed = (2 * tm * D * 4 + 2 * tm * Cpad * 4 + 2 * weight_bytes + 4 * tm * H * 4)
    vmem_limit = int(min(max(2 * vmem_needed, 32 << 20), 64 << 20))

    out = pl.pallas_call(
        _mlp_rows_kernel,
        out_shape=jax.ShapeDtypeStruct((Mpad, Cpad), jnp.float32),
        grid=(nm,),
        in_specs=[
            pl.BlockSpec((tm, D), lambda i: (i, 0)),        # row tile of flattened x (f32)
            pl.BlockSpec((D, H), lambda i: (0, 0)),         # w1: single resident copy
            pl.BlockSpec((1, H), lambda i: (0, 0)),         # b1
            pl.BlockSpec((H, H), lambda i: (0, 0)),         # w2
            pl.BlockSpec((1, H), lambda i: (0, 0)),         # b2
            pl.BlockSpec((H, Cpad), lambda i: (0, 0)),      # w3 (lane-padded cols)
            pl.BlockSpec((1, Cpad), lambda i: (0, 0)),      # b3 (lane-padded)
        ],
        out_specs=pl.BlockSpec((tm, Cpad), lambda i: (i, 0)),
        compiler_params=pltpu.CompilerParams(
            dimension_semantics=("parallel",),
            vmem_limit_bytes=vmem_limit),
        cost_estimate=pl.CostEstimate(
            flops=flops, transcendentals=0, bytes_accessed=bytes_accessed),
    )(xr, prepared["w1"], prepared["b1"], prepared["w2"], prepared["b2"],
      prepared["w3"], prepared["b3"])

    # Trailing late-fusion reduce: mean over clips of the per-row logits (tiny).
    logits = out[:M, :C].reshape(NC, B, C).mean(axis=0)
    return logits, {}


# Pure-JAX f32 reference for sanity checking.
def mlp_late_fusion_reference(x, params):
    NC = x.shape[0]
    outs = []
    for c in range(NC):
        h = jnp.maximum(x[c] @ params["w1"] + params["b1"], 0.0)
        h = jnp.maximum(h @ params["w2"] + params["b2"], 0.0)
        outs.append(h @ params["w3"] + params["b3"])
    return jnp.stack(outs, 0).mean(0)


if __name__ == "__main__":
    # Small, module-consistent shapes: num_clips=4, batch=2, num_input=32, num_classes=8
    NUM_CLIPS, B, NUM_INPUT, NUM_CLASSES = 4, 2, 32, 8

    key = jax.random.PRNGKey(0)
    kx, kp = jax.random.split(key)
    x = jax.random.normal(kx, (NUM_CLIPS, B, NUM_INPUT), jnp.float32)
    params = init_params(kp, NUM_INPUT, NUM_CLASSES)
    prepared = prepare_params(params)   # one-time weight prep (not per forward call)

    logits, extras = mlp_late_fusion_forward(x, prepared)
    logits = jax.block_until_ready(logits)

    ref = mlp_late_fusion_reference(x, params)
    # bf16 MXU operands with f32 accumulation -> ~1e-2-level error vs the f32 reference.
    np.testing.assert_allclose(np.asarray(logits), np.asarray(ref), rtol=2e-2, atol=2e-2)
    assert logits.shape == (B, NUM_CLASSES) and extras == {}

    print("KERNEL_OK")
</pallas_src>

<mosaic_0001>
module attributes {stable_mosaic.version = 11 : i64} {
  func.func @_mlp_rows_kernel(%arg0: i32, %arg1: memref<128x32xf32, #tpu.memory_space<vmem>>, %arg2: memref<32x512xbf16, #tpu.memory_space<vmem>>, %arg3: memref<1x512xf32, #tpu.memory_space<vmem>>, %arg4: memref<512x512xbf16, #tpu.memory_space<vmem>>, %arg5: memref<1x512xf32, #tpu.memory_space<vmem>>, %arg6: memref<512x128xbf16, #tpu.memory_space<vmem>>, %arg7: memref<1x128xf32, #tpu.memory_space<vmem>>, %arg8: memref<128x128xf32, #tpu.memory_space<vmem>>) attributes {dimension_semantics = [#tpu.dimension_semantics<parallel>], iteration_bounds = array<i64: 1>, scalar_prefetch = 0 : i64, scratch_operands = 0 : i64, tpu.core_type = #tpu.core_type<tc>, window_params = [{transform_indices = @transform_0, window_bounds = array<i64: 128, 32>}, {pipeline_mode = #tpu.pipeline_mode<synchronous>, transform_indices = @transform_1, window_bounds = array<i64: 32, 512>}, {pipeline_mode = #tpu.pipeline_mode<synchronous>, transform_indices = @transform_2, window_bounds = array<i64: 1, 512>}, {pipeline_mode = #tpu.pipeline_mode<synchronous>, transform_indices = @transform_3, window_bounds = array<i64: 512, 512>}, {pipeline_mode = #tpu.pipeline_mode<synchronous>, transform_indices = @transform_4, window_bounds = array<i64: 1, 512>}, {pipeline_mode = #tpu.pipeline_mode<synchronous>, transform_indices = @transform_5, window_bounds = array<i64: 512, 128>}, {pipeline_mode = #tpu.pipeline_mode<synchronous>, transform_indices = @transform_6, window_bounds = array<i64: 1, 128>}, {transform_indices = @transform_7, window_bounds = array<i64: 128, 128>}]} {
    %c0 = arith.constant 0 : index
    %c0_0 = arith.constant 0 : index
    %0 = vector.load %arg1[%c0, %c0_0] : memref<128x32xf32, #tpu.memory_space<vmem>>, vector<128x32xf32>
    %1 = arith.truncf %0 : vector<128x32xf32> to vector<128x32xbf16>
    %c0_1 = arith.constant 0 : index
    %c0_2 = arith.constant 0 : index
    %2 = vector.load %arg2[%c0_1, %c0_2] : memref<32x512xbf16, #tpu.memory_space<vmem>>, vector<32x512xbf16>
    %cst = arith.constant dense<0.000000e+00> : vector<128x512xf32>
    %3 = tpu.matmul %1, %2, %cst {dimension_numbers = #tpu.dot_dimension_numbers<[1], [0], [0], [1], [0, 0, 1, 1], [], []>} : vector<128x32xbf16>, vector<32x512xbf16>, vector<128x512xf32> -> vector<128x512xf32>
    %c0_3 = arith.constant 0 : index
    %c0_4 = arith.constant 0 : index
    %4 = vector.load %arg3[%c0_3, %c0_4] : memref<1x512xf32, #tpu.memory_space<vmem>>, vector<1x512xf32>
    %5 = vector.broadcast %4 : vector<1x512xf32> to vector<128x512xf32>
    %6 = arith.addf %3, %5 : vector<128x512xf32>
    %cst_5 = arith.constant 0.000000e+00 : f32
    %7 = vector.broadcast %cst_5 : f32 to vector<128x512xf32>
    %8 = arith.maximumf %6, %7 : vector<128x512xf32>
    %9 = arith.truncf %8 : vector<128x512xf32> to vector<128x512xbf16>
    %c0_6 = arith.constant 0 : index
    %c0_7 = arith.constant 0 : index
    %10 = vector.load %arg4[%c0_6, %c0_7] : memref<512x512xbf16, #tpu.memory_space<vmem>>, vector<512x512xbf16>
    %cst_8 = arith.constant dense<0.000000e+00> : vector<128x512xf32>
    %11 = tpu.matmul %9, %10, %cst_8 {dimension_numbers = #tpu.dot_dimension_numbers<[1], [0], [0], [1], [0, 0, 1, 1], [], []>} : vector<128x512xbf16>, vector<512x512xbf16>, vector<128x512xf32> -> vector<128x512xf32>
    %c0_9 = arith.constant 0 : index
    %c0_10 = arith.constant 0 : index
    %12 = vector.load %arg5[%c0_9, %c0_10] : memref<1x512xf32, #tpu.memory_space<vmem>>, vector<1x512xf32>
    %13 = vector.broadcast %12 : vector<1x512xf32> to vector<128x512xf32>
    %14 = arith.addf %11, %13 : vector<128x512xf32>
    %cst_11 = arith.constant 0.000000e+00 : f32
    %15 = vector.broadcast %cst_11 : f32 to vector<128x512xf32>
    %16 = arith.maximumf %14, %15 : vector<128x512xf32>
    %17 = arith.truncf %16 : vector<128x512xf32> to vector<128x512xbf16>
    %c0_12 = arith.constant 0 : index
    %c0_13 = arith.constant 0 : index
    %18 = vector.load %arg6[%c0_12, %c0_13] : memref<512x128xbf16, #tpu.memory_space<vmem>>, vector<512x128xbf16>
    %cst_14 = arith.constant dense<0.000000e+00> : vector<128x128xf32>
    %19 = tpu.matmul %17, %18, %cst_14 {dimension_numbers = #tpu.dot_dimension_numbers<[1], [0], [0], [1], [0, 0, 1, 1], [], []>} : vector<128x512xbf16>, vector<512x128xbf16>, vector<128x128xf32> -> vector<128x128xf32>
    %c0_15 = arith.constant 0 : index
    %c0_16 = arith.constant 0 : index
    %20 = vector.load %arg7[%c0_15, %c0_16] : memref<1x128xf32, #tpu.memory_space<vmem>>, vector<1x128xf32>
    %21 = vector.broadcast %20 : vector<1x128xf32> to vector<128x128xf32>
    %22 = arith.addf %19, %21 : vector<128x128xf32>
    %c0_17 = arith.constant 0 : index
    %c0_18 = arith.constant 0 : index
    %23 = vector.load %arg8[%c0_17, %c0_18] : memref<128x128xf32, #tpu.memory_space<vmem>>, vector<128x128xf32>
    tpu.vector_store %arg8[%c0_17, %c0_18], %22 {strides = array<i32>} : memref<128x128xf32, #tpu.memory_space<vmem>>, vector<128x128xf32>,
    return
  }
  func.func @transform_0(%arg0: i32) -> (i32, i32) {
    %c0_i32 = arith.constant 0 : i32
    %c0_i32_0 = arith.constant 0 : i32
    return %arg0, %c0_i32 : i32, i32
  }
  func.func @transform_1(%arg0: i32) -> (i32, i32) {
    %c0_i32 = arith.constant 0 : i32
    %c0_i32_0 = arith.constant 0 : i32
    %c0_i32_1 = arith.constant 0 : i32
    return %c0_i32, %c0_i32_0 : i32, i32
  }
  func.func @transform_2(%arg0: i32) -> (i32, i32) {
    %c0_i32 = arith.constant 0 : i32
    %c0_i32_0 = arith.constant 0 : i32
    %c0_i32_1 = arith.constant 0 : i32
    return %c0_i32, %c0_i32_0 : i32, i32
  }
  func.func @transform_3(%arg0: i32) -> (i32, i32) {
    %c0_i32 = arith.constant 0 : i32
    %c0_i32_0 = arith.constant 0 : i32
    %c0_i32_1 = arith.constant 0 : i32
    return %c0_i32, %c0_i32_0 : i32, i32
  }
  func.func @transform_4(%arg0: i32) -> (i32, i32) {
    %c0_i32 = arith.constant 0 : i32
    %c0_i32_0 = arith.constant 0 : i32
    %c0_i32_1 = arith.constant 0 : i32
    return %c0_i32, %c0_i32_0 : i32, i32
  }
  func.func @transform_5(%arg0: i32) -> (i32, i32) {
    %c0_i32 = arith.constant 0 : i32
    %c0_i32_0 = arith.constant 0 : i32
    %c0_i32_1 = arith.constant 0 : i32
    return %c0_i32, %c0_i32_0 : i32, i32
  }
  func.func @transform_6(%arg0: i32) -> (i32, i32) {
    %c0_i32 = arith.constant 0 : i32
    %c0_i32_0 = arith.constant 0 : i32
    %c0_i32_1 = arith.constant 0 : i32
    return %c0_i32, %c0_i32_0 : i32, i32
  }
  func.func @transform_7(%arg0: i32) -> (i32, i32) {
    %c0_i32 = arith.constant 0 : i32
    %c0_i32_0 = arith.constant 0 : i32
    return %arg0, %c0_i32 : i32, i32
  }
}

</mosaic_0001>

<bundles_post_ra>
// kernel: tpu_custom_call.1
= control target key start
LH: loop header
LB: loop body
LE: loop exit
PB: predicated region body
PF: predicated region fallthrough
CT: control target
= control target key end

     0   :  { %12 = vsyncpa [#allocation3], 0  ;;  %s4202_s0 = inlined_call_operand.vmem [shape: f32[128,32], index: 0, kind: input, shape index: {}]   ;;  %s4203_s1 = inlined_call_operand.vmem [shape: bf16[32,512], index: 1, kind: input, shape index: {}]   ;;  %s4204_s2 = inlined_call_operand.vmem [shape: f32[1,512], index: 2, kind: input, shape index: {}]   ;;  %s4205_s3 = inlined_call_operand.hbm [shape: bf16[512,512], index: 3, kind: input, shape index: {}]   ;;  %s4206_s4 = inlined_call_operand.vmem [shape: f32[1,512], index: 4, kind: input, shape index: {}]   ;;  %s4207_s5 = inlined_call_operand.hbm [shape: bf16[512,128], index: 5, kind: input, shape index: {}]   ;;  %s4208_s6 = inlined_call_operand.vmem [shape: f32[1,128], index: 6, kind: input, shape index: {}]   ;;  %s4209_s7 = inlined_call_operand.hbm [shape: f32[128,128], index: 7, kind: output, shape index: {}]  }
   0x1   :  { %13 = vsyncpa [#allocation6], 0 }
   0x2   :  { %14 = vsyncpa [#allocation4], 0  ;;  %s25_s26 = sshll.u32 %s4205_s3, 4  ;;  %s3570_s27 = smov [#allocation2]   ;;  %s26_s26 = int_to_ptr.hbm [resolvable:$true] %s25_s26 }
   0x3   :  { %s27_s28 = sshll.u32 %s3570_s27, 4  ;;  %s40_s8 = sshll.u32 %s4207_s5, 4  ;;  %s28_s28 = int_to_ptr.vmem [resolvable:$true] %s27_s28  ;;  %s41_s8 = int_to_ptr.hbm [resolvable:$true] %s40_s8 }
   0x4   :  { %s3571_s9 = smov 256   ;;  %s3572_s10 = smov 16  }
   0x5   :  { %33 = dma.hbm_to_vmem [thread:$0]  %s26_s26, 16384, %s28_s28, [#allocation3], %s3571_s9, %s3571_s9, %s3572_s10  }
   0x6   :  { %s3573_s11 = smov [#allocation5]   ;;  %s3574_s13 = smov 64  }
   0x7   :  { %s42_s12 = sshll.u32 %s3573_s11, 4  ;;  %s3575_s14 = smov 4   ;;  %s43_s12 = int_to_ptr.vmem [resolvable:$true] %s42_s12 }
   0x8   :  { %48 = dma.hbm_to_vmem [thread:$0]  %s41_s8, 4096, %s43_s12, [#allocation6], %s3574_s13, %s3574_s13, %s3575_s14  }
   0x9   :  { %3564 = dma.done.wait [#allocation3], 16384  }
   0xa   :  { %3565 = vsyncadd [#allocation3], 4294950912 }
   0xb   :  { %3566 = dma.done.wait [#allocation6], 4096  }
   0xc   :  { %3567 = vsyncadd [#allocation6], 4294963200  ;;  %v2627_v0 = vld [vmem:[%s4203_s1 + $0x20] sm:$0xf]  ;;  %v3319_v1 = vld [vmem:[%s4203_s1 + $0x2c] sm:$0xf0] }
   0xd   :  { %v3317_v2 = vld [vmem:[%s4203_s1 + $0x24] sm:$0xf]  ;;  %v2628_v3 = vor.u32 %v3319_v1, %v2627_v0  ;;  %v2629_v4 = vld [vmem:[%s4203_s1 + $0x30] sm:$0xf0]  ;;  %v2635_v5 = vld [vmem:[%s4203_s1 + $0x28] sm:$0xf] }
   0xe   :  { %v3320_v6 = vld [vmem:[%s4203_s1 + $0x34] sm:$0xf0]  ;;  %v2632_v7 = vor.u32 %v3317_v2, %v2629_v4  ;;  %v3318_v9 = vld [vmem:[%s4203_s1 + $0x2c] sm:$0xf]  ;;  %v2637_v10 = vld [vmem:[%s4203_s1 + $0x38] sm:$0xf0] }
   0xf   :  { %v2636_v8 = vor.u32 %v3320_v6, %v2635_v5  ;;  %v2611_v11 = vld [vmem:[%s4203_s1] sm:$0xf]  ;;  %173 = vmatpush.bf16.msra.mxu0 %v2628_v3  ;;  %v2640_v12 = vor.u32 %v3318_v9, %v2637_v10  ;;  %v3315_v13 = vld [vmem:[%s4203_s1 + $0xc] sm:$0xf0]  ;;  %v3313_v14 = vld [vmem:[%s4203_s1 + $0x4] sm:$0xf] }
  0x10   :  { %v2613_v15 = vld [vmem:[%s4203_s1 + $0x10] sm:$0xf0]  ;;  %222 = vmatpush.bf16.msra.mxu1 %v2632_v7  ;;  %v2612_v16 = vor.u32 %v3315_v13, %v2611_v11  ;;  %v2619_v18 = vld [vmem:[%s4203_s1 + $0x8] sm:$0xf]  ;;  %v3316_v19 = vld [vmem:[%s4203_s1 + $0x14] sm:$0xf0] }
  0x11   :  { %271 = vmatpush.bf16.msra.mxu2 %v2636_v8  ;;  %v2616_v17 = vor.u32 %v3313_v14, %v2613_v15  ;;  %v3314_v20 = vld [vmem:[%s4203_s1 + $0xc] sm:$0xf]  ;;  %320 = vmatpush.bf16.msra.mxu3 %v2640_v12  ;;  %v2620_v21 = vor.u32 %v3316_v19, %v2619_v18  ;;  %v2621_v22 = vld [vmem:[%s4203_s1 + $0x18] sm:$0xf0]  ;;  %v60_v23 = vld [vmem:[%s4202_s0] sm:$0xff]  ;;  %vm142_vm0 = vcmask 261120  }
  0x12   :  { %v61_v24 = vld [vmem:[%s4202_s0 + $0x8] sm:$0xff]  ;;  %v2624_v25 = vor.u32 %v3314_v20, %v2621_v22  ;;  %v3043_v27 = vld [vmem:[#allocation2 + $0x2e0] sm:$0xf]  ;;  %v3415_v28 = vld [vmem:[#allocation2 + $0x2ec] sm:$0xf0]  ;;  %s2595_s10 = sshll.u32 %s4209_s7, 4  ;;  %s2596_s10 = int_to_ptr.hbm [resolvable:$true] %s2595_s10 }
  0x13   :  { %v76_v26 = vpack.c.bf16 %v61_v24, %v60_v23  ;;  %174 = vmatpush.bf16.msra.mxu0 %v2612_v16  ;;  %v2787_v29 = vld [vmem:[#allocation2 + $0xe0] sm:$0xf]  ;;  %v3351_v30 = vld [vmem:[#allocation2 + $0xec] sm:$0xf0]  ;;  %v3044_v31 = vor.u32 %v3415_v28, %v3043_v27  ;;  %v63_v52 = vld [vmem:[%s4202_s0 + $0x18] sm:$0xff]  ;;  %s3577_s11 = smov 128  }
  0x14   :  { %223 = vmatpush.bf16.msra.mxu1 %v2616_v17  ;;  %v2788_v32 = vor.u32 %v3351_v30, %v2787_v29  ;;  %v3171_v33 = vld [vmem:[#allocation2 + $0x3e0] sm:$0xf]  ;;  %v3447_v34 = vld [vmem:[#allocation2 + $0x3ec] sm:$0xf0]  ;;  %v65_v3 = vld [vmem:[%s4202_s0 + $0x28] sm:$0xff]  ;;  %s3578_s12 = smov 8  }
  0x15   :  { %272 = vmatpush.bf16.msra.mxu2 %v2620_v21  ;;  %v2915_v35 = vld [vmem:[#allocation2 + $0x1e0] sm:$0xf]  ;;  %321 = vmatpush.bf16.msra.mxu3 %v2624_v25  ;;  %v3172_v36 = vor.u32 %v3447_v34, %v3171_v33  ;;  %v3383_v37 = vld [vmem:[#allocation2 + $0x1ec] sm:$0xf0]  ;;  %v67_v18 = vld [vmem:[%s4202_s0 + $0x38] sm:$0xff] }
  0x16   :  { %2641 = vmatmul.msk.bf16.vlgmr.msra.gmra.mxu0 %vm142_vm0, %v76_v26  ;;  %v2916_v38 = vor.u32 %v3383_v37, %v2915_v35  ;;  %v3027_v39 = vld [vmem:[#allocation2 + $0x2c0] sm:$0xf]  ;;  %v3411_v40 = vld [vmem:[#allocation2 + $0x2cc] sm:$0xf0]  ;;  %v69_v33 = vld [vmem:[%s4202_s0 + $0x48] sm:$0xff] }
  0x17   :  { %2649 = vmatmul.msk.bf16.vlgmr.msra.gmra.mxu1 %vm142_vm0, %v76_v26  ;;  %1237 = vmatpush.bf16.msrb.mxu0 %v2788_v32  ;;  %v2771_v41 = vld [vmem:[#allocation2 + $0xc0] sm:$0xf]  ;;  %v3028_v42 = vor.u32 %v3411_v40, %v3027_v39  ;;  %v3347_v43 = vld [vmem:[#allocation2 + $0xcc] sm:$0xf0] }
  0x18   :  { %2657 = vmatmul.msk.bf16.vlgmr.msra.gmra.mxu2 %vm142_vm0, %v76_v26  ;;  %2665 = vmatmul.msk.bf16.vlgmr.msra.gmra.mxu3 %vm142_vm0, %v76_v26  ;;  %v3155_v44 = vld [vmem:[#allocation2 + $0x3c0] sm:$0xf]  ;;  %v3443_v45 = vld [vmem:[#allocation2 + $0x3cc] sm:$0xf0]  ;;  %v2772_v46 = vor.u32 %v3347_v43, %v2771_v41 }
  0x19   :  { %1335 = vmatpush.bf16.msrb.mxu2 %v3044_v31  ;;  %1384 = vmatpush.bf16.msrb.mxu3 %v3172_v36  ;;  %v3156_v47 = vor.u32 %v3443_v45, %v3155_v44  ;;  %v2899_v48 = vld [vmem:[#allocation2 + $0x1c0] sm:$0xf]  ;;  %v3379_v49 = vld [vmem:[#allocation2 + $0x1cc] sm:$0xf0] }
  0x1a   :  { %1286 = vmatpush.bf16.msrb.mxu1 %v2916_v38  ;;  %v2900_v50 = vor.u32 %v3379_v49, %v2899_v48  ;;  %v62_v51 = vld [vmem:[%s4202_s0 + $0x10] sm:$0xff]  ;;  %v3011_v54 = vld [vmem:[#allocation2 + $0x2a0] sm:$0xf]  ;;  %v71_v48 = vld [vmem:[%s4202_s0 + $0x58] sm:$0xff] }
  0x1b   :  { %1238 = vmatpush.bf16.msrb.mxu0 %v2772_v46  ;;  %v77_v53 = vpack.c.bf16 %v63_v52, %v62_v51  ;;  %v3407_v55 = vld [vmem:[#allocation2 + $0x2ac] sm:$0xf0]  ;;  %v2755_v56 = vld [vmem:[#allocation2 + $0xa0] sm:$0xf] }
  0x1c   :  { %v3012_v57 = vor.u32 %v3407_v55, %v3011_v54  ;;  %v3343_v58 = vld [vmem:[#allocation2 + $0xac] sm:$0xf0]  ;;  %v3139_v59 = vld [vmem:[#allocation2 + $0x3a0] sm:$0xf] }
  0x1d   :  { %1336 = vmatpush.bf16.msrb.mxu2 %v3028_v42  ;;  %1385 = vmatpush.bf16.msrb.mxu3 %v3156_v47  ;;  %v3439_v60 = vld [vmem:[#allocation2 + $0x3ac] sm:$0xf0]  ;;  %v2756_v61 = vor.u32 %v3343_v58, %v2755_v56  ;;  %v2883_v63 = vld [vmem:[#allocation2 + $0x1a0] sm:$0xf] }
  0x1e   :  { %1287 = vmatpush.bf16.msrb.mxu1 %v2900_v50  ;;  %v3140_v62 = vor.u32 %v3439_v60, %v3139_v59  ;;  %v3375_v0 = vld [vmem:[#allocation2 + $0x1ac] sm:$0xf0]  ;;  %v64_v2 = vld [vmem:[%s4202_s0 + $0x20] sm:$0xff] }
  0x1f   :  { %v2884_v1 = vor.u32 %v3375_v0, %v2883_v63  ;;  %1239 = vmatpush.bf16.msrb.mxu0 %v2756_v61  ;;  %v78_v4 = vpack.c.bf16 %v65_v3, %v64_v2  ;;  %v2995_v5 = vld [vmem:[#allocation2 + $0x280] sm:$0xf]  ;;  %v3403_v6 = vld [vmem:[#allocation2 + $0x28c] sm:$0xf0]  ;;  %v73_v63 = vld [vmem:[%s4202_s0 + $0x68] sm:$0xff] }
  0x20   :  { %v2739_v7 = vld [vmem:[#allocation2 + $0x80] sm:$0xf]  ;;  %v2996_v8 = vor.u32 %v3403_v6, %v2995_v5  ;;  %v3339_v9 = vld [vmem:[#allocation2 + $0x8c] sm:$0xf0]  ;;  %v75_v5 = vld [vmem:[%s4202_s0 + $0x78] sm:$0xff] }
  0x21   :  { %1337 = vmatpush.bf16.msrb.mxu2 %v3012_v57  ;;  %1386 = vmatpush.bf16.msrb.mxu3 %v3140_v62  ;;  %v3123_v10 = vld [vmem:[#allocation2 + $0x380] sm:$0xf]  ;;  %v3435_v11 = vld [vmem:[#allocation2 + $0x38c] sm:$0xf0]  ;;  %v2740_v12 = vor.u32 %v3339_v9, %v2739_v7 }
  0x22   :  { %1288 = vmatpush.bf16.msrb.mxu1 %v2884_v1  ;;  %v3124_v13 = vor.u32 %v3435_v11, %v3123_v10  ;;  %v2867_v14 = vld [vmem:[#allocation2 + $0x180] sm:$0xf]  ;;  %v3371_v15 = vld [vmem:[#allocation2 + $0x18c] sm:$0xf0] }
  0x23   :  { %v2868_v16 = vor.u32 %v3371_v15, %v2867_v14  ;;  %1240 = vmatpush.bf16.msrb.mxu0 %v2740_v12  ;;  %v66_v17 = vld [vmem:[%s4202_s0 + $0x30] sm:$0xff]  ;;  %v2979_v20 = vld [vmem:[#allocation2 + $0x260] sm:$0xf] }
  0x24   :  { %v79_v19 = vpack.c.bf16 %v67_v18, %v66_v17  ;;  %v3399_v21 = vld [vmem:[#allocation2 + $0x26c] sm:$0xf0]  ;;  %v2723_v22 = vld [vmem:[#allocation2 + $0x60] sm:$0xf]  ;;  %v3045_v17 = vld [vmem:[#allocation2 + $0x2f0] sm:$0xf0] }
  0x25   :  { %1338 = vmatpush.bf16.msrb.mxu2 %v2996_v8  ;;  %1387 = vmatpush.bf16.msrb.mxu3 %v3124_v13  ;;  %v2980_v23 = vor.u32 %v3399_v21, %v2979_v20  ;;  %v3335_v24 = vld [vmem:[#allocation2 + $0x6c] sm:$0xf0]  ;;  %v3107_v25 = vld [vmem:[#allocation2 + $0x360] sm:$0xf]  ;;  %v2789_v20 = vld [vmem:[#allocation2 + $0xf0] sm:$0xf0] }
  0x26   :  { %2642 = vmatmul.msk.bf16.gmra.mxu0 %vm142_vm0, %v77_v53  ;;  %1289 = vmatpush.bf16.msrb.mxu1 %v2868_v16  ;;  %v3431_v26 = vld [vmem:[#allocation2 + $0x36c] sm:$0xf0]  ;;  %v2724_v27 = vor.u32 %v3335_v24, %v2723_v22  ;;  %v2851_v29 = vld [vmem:[#allocation2 + $0x160] sm:$0xf]  ;;  %v3413_v16 = vld [vmem:[#allocation2 + $0x2e4] sm:$0xf] }
  0x27   :  { %2650 = vmatmul.msk.bf16.gmra.mxu1 %vm142_vm0, %v77_v53  ;;  %v3108_v28 = vor.u32 %v3431_v26, %v3107_v25  ;;  %v3367_v30 = vld [vmem:[#allocation2 + $0x16c] sm:$0xf0]  ;;  %v68_v32 = vld [vmem:[%s4202_s0 + $0x40] sm:$0xff]  ;;  %v3048_v18 = vor.u32 %v3413_v16, %v3045_v17  ;;  %v2917_v26 = vld [vmem:[#allocation2 + $0x1f0] sm:$0xf0] }
  0x28   :  { %2658 = vmatmul.msk.bf16.gmra.mxu2 %vm142_vm0, %v77_v53  ;;  %2666 = vmatmul.msk.bf16.gmra.mxu3 %vm142_vm0, %v77_v53  ;;  %v2852_v31 = vor.u32 %v3367_v30, %v2851_v29  ;;  %v80_v34 = vpack.c.bf16 %v69_v33, %v68_v32  ;;  %v2963_v35 = vld [vmem:[#allocation2 + $0x240] sm:$0xf]  ;;  %v3395_v36 = vld [vmem:[#allocation2 + $0x24c] sm:$0xf0]  ;;  %v3445_v21 = vld [vmem:[#allocation2 + $0x3e4] sm:$0xf] }
  0x29   :  { %1339 = vmatpush.bf16.msrb.mxu2 %v2980_v23  ;;  %1241 = vmatpush.bf16.msrb.mxu0 %v2724_v27  ;;  %v2707_v37 = vld [vmem:[#allocation2 + $0x40] sm:$0xf]  ;;  %v2964_v38 = vor.u32 %v3395_v36, %v2963_v35  ;;  %v3331_v39 = vld [vmem:[#allocation2 + $0x4c] sm:$0xf0]  ;;  %v3173_v23 = vld [vmem:[#allocation2 + $0x3f0] sm:$0xf0] }
  0x2a   :  { %1388 = vmatpush.bf16.msrb.mxu3 %v3108_v28  ;;  %1290 = vmatpush.bf16.msrb.mxu1 %v2852_v31  ;;  %v3091_v40 = vld [vmem:[#allocation2 + $0x340] sm:$0xf]  ;;  %v3427_v41 = vld [vmem:[#allocation2 + $0x34c] sm:$0xf0]  ;;  %v2708_v42 = vor.u32 %v3331_v39, %v2707_v37  ;;  %v3176_v24 = vor.u32 %v3445_v21, %v3173_v23  ;;  %v3381_v25 = vld [vmem:[#allocation2 + $0x1e4] sm:$0xf] }
  0x2b   :  { %v3092_v43 = vor.u32 %v3427_v41, %v3091_v40  ;;  %v2835_v44 = vld [vmem:[#allocation2 + $0x140] sm:$0xf]  ;;  %v3363_v45 = vld [vmem:[#allocation2 + $0x14c] sm:$0xf0]  ;;  %v2920_v27 = vor.u32 %v3381_v25, %v2917_v26  ;;  %v3409_v36 = vld [vmem:[#allocation2 + $0x2c4] sm:$0xf] }
  0x2c   :  { %v2836_v46 = vor.u32 %v3363_v45, %v2835_v44  ;;  %v70_v47 = vld [vmem:[%s4202_s0 + $0x50] sm:$0xff]  ;;  %v2947_v50 = vld [vmem:[#allocation2 + $0x220] sm:$0xf]  ;;  %v3341_v25 = vld [vmem:[#allocation2 + $0xa4] sm:$0xf] }
  0x2d   :  { %1340 = vmatpush.bf16.msrb.mxu2 %v2964_v38  ;;  %1242 = vmatpush.bf16.msrb.mxu0 %v2708_v42  ;;  %v81_v49 = vpack.c.bf16 %v71_v48, %v70_v47  ;;  %v3391_v51 = vld [vmem:[#allocation2 + $0x22c] sm:$0xf0]  ;;  %v2691_v52 = vld [vmem:[#allocation2 + $0x20] sm:$0xf]  ;;  %v3029_v37 = vld [vmem:[#allocation2 + $0x2d0] sm:$0xf0] }
  0x2e   :  { %1389 = vmatpush.bf16.msrb.mxu3 %v3092_v43  ;;  %1291 = vmatpush.bf16.msrb.mxu1 %v2836_v46  ;;  %v2948_v53 = vor.u32 %v3391_v51, %v2947_v50  ;;  %v3327_v54 = vld [vmem:[#allocation2 + $0x2c] sm:$0xf0]  ;;  %v3075_v55 = vld [vmem:[#allocation2 + $0x320] sm:$0xf]  ;;  %v3032_v40 = vor.u32 %v3409_v36, %v3029_v37  ;;  %v2773_v50 = vld [vmem:[#allocation2 + $0xd0] sm:$0xf0] }
  0x2f   :  { %v3423_v56 = vld [vmem:[#allocation2 + $0x32c] sm:$0xf0]  ;;  %v2692_v57 = vor.u32 %v3327_v54, %v2691_v52  ;;  %v2819_v59 = vld [vmem:[#allocation2 + $0x120] sm:$0xf]  ;;  %v3157_v54 = vld [vmem:[#allocation2 + $0x3d0] sm:$0xf0] }
  0x30   :  { %v3076_v58 = vor.u32 %v3423_v56, %v3075_v55  ;;  %v3359_v60 = vld [vmem:[#allocation2 + $0x12c] sm:$0xf0]  ;;  %v72_v62 = vld [vmem:[%s4202_s0 + $0x60] sm:$0xff]  ;;  %v2757_v26 = vld [vmem:[#allocation2 + $0xb0] sm:$0xf0] }
  0x31   :  { %1341 = vmatpush.bf16.msrb.mxu2 %v2948_v53  ;;  %v2820_v61 = vor.u32 %v3359_v60, %v2819_v59  ;;  %1243 = vmatpush.bf16.msrb.mxu0 %v2692_v57  ;;  %v82_v0 = vpack.c.bf16 %v73_v63, %v72_v62  ;;  %v2931_v1 = vld [vmem:[#allocation2 + $0x200] sm:$0xf]  ;;  %v3387_v2 = vld [vmem:[#allocation2 + $0x20c] sm:$0xf0]  ;;  %v3441_v53 = vld [vmem:[#allocation2 + $0x3c4] sm:$0xf] }
  0x32   :  { %1390 = vmatpush.bf16.msrb.mxu3 %v3076_v58  ;;  %v2932_v3 = vor.u32 %v3387_v2, %v2931_v1  ;;  %v2675_v6 = vld [vmem:[#allocation2] sm:$0xf]  ;;  %v3323_v7 = vld [vmem:[#allocation2 + $0xc] sm:$0xf0]  ;;  %v3160_v56 = vor.u32 %v3441_v53, %v3157_v54  ;;  %v3377_v59 = vld [vmem:[#allocation2 + $0x1c4] sm:$0xf] }
  0x33   :  { %1292 = vmatpush.bf16.msrb.mxu1 %v2820_v61  ;;  %v3059_v8 = vld [vmem:[#allocation2 + $0x300] sm:$0xf]  ;;  %v2676_v9 = vor.u32 %v3323_v7, %v2675_v6  ;;  %v3419_v10 = vld [vmem:[#allocation2 + $0x30c] sm:$0xf0]  ;;  %v2901_v60 = vld [vmem:[#allocation2 + $0x1d0] sm:$0xf0] }
  0x34   :  { %v2803_v11 = vld [vmem:[#allocation2 + $0x100] sm:$0xf]  ;;  %v3355_v12 = vld [vmem:[#allocation2 + $0x10c] sm:$0xf0]  ;;  %v3060_v13 = vor.u32 %v3419_v10, %v3059_v8  ;;  %v2904_v63 = vor.u32 %v3377_v59, %v2901_v60  ;;  %v3373_v37 = vld [vmem:[#allocation2 + $0x1a4] sm:$0xf] }
  0x35   :  { %1342 = vmatpush.bf16.msrb.mxu2 %v2932_v3  ;;  %v2804_v14 = vor.u32 %v3355_v12, %v2803_v11  ;;  %1244 = vmatpush.bf16.msrb.mxu0 %v2676_v9  ;;  %v92_v28 = vld [vmem:[%s4204_s2] sm:$0xf]  ;;  %v3401_v60 = vld [vmem:[#allocation2 + $0x284] sm:$0xf] }
  0x36   :  { %2643 = vmatmul.msk.bf16.gmra.mxu0 %vm142_vm0, %v78_v4  ;;  %1391 = vmatpush.bf16.msrb.mxu3 %v3060_v13  ;;  %v3756_v30 = vperm.slane %v92_v28, 0  ;;  %v3758_v32 = vperm.slane %v92_v28, 1  ;;  %v3763_v45 = vperm.slane %v92_v28, 2  ;;  %v3766_v47 = vperm.slane %v92_v28, 3 }
  0x37   :  { %2651 = vmatmul.msk.bf16.gmra.mxu1 %vm142_vm0, %v78_v4  ;;  %v2760_v28 = vor.u32 %v3341_v25, %v2757_v26 }
  0x38   :  { %2659 = vmatmul.msk.bf16.gmra.mxu2 %vm142_vm0, %v78_v4  ;;  %2667 = vmatmul.msk.bf16.gmra.mxu3 %vm142_vm0, %v78_v4  ;;  %v74_v4 = vld [vmem:[%s4202_s0 + $0x70] sm:$0xff] }
  0x39   :  { %v83_v15 = vpack.c.bf16 %v75_v5, %v74_v4  ;;  %1293 = vmatpush.bf16.msrb.mxu1 %v2804_v14  ;;  %1531 = vmatpush.bf16.msra.mxu2 %v3048_v18  ;;  %v3405_v14 = vld [vmem:[#allocation2 + $0x2a4] sm:$0xf] }
  0x3a   :  { %1580 = vmatpush.bf16.msra.mxu3 %v3176_v24 }
  0x3d   :  { %1482 = vmatpush.bf16.msra.mxu1 %v2920_v27  ;;  %1532 = vmatpush.bf16.msra.mxu2 %v3032_v40 }
  0x3e   :  { %1581 = vmatpush.bf16.msra.mxu3 %v3160_v56 }
  0x41   :  { %1483 = vmatpush.bf16.msra.mxu1 %v2904_v63 }
  0x46   :  { %2644 = vmatmul.msk.bf16.gmra.mxu0 %vm142_vm0, %v79_v19 }
  0x47   :  { %2652 = vmatmul.msk.bf16.gmra.mxu1 %vm142_vm0, %v79_v19 }
  0x48   :  { %2660 = vmatmul.msk.bf16.gmra.mxu2 %vm142_vm0, %v79_v19  ;;  %2668 = vmatmul.msk.bf16.gmra.mxu3 %vm142_vm0, %v79_v19  ;;  %v3349_v19 = vld [vmem:[#allocation2 + $0xe4] sm:$0xf] }
  0x49   :  { %v2792_v22 = vor.u32 %v3349_v19, %v2789_v20 }
  0x4b   :  { %1433 = vmatpush.bf16.msra.mxu0 %v2792_v22 }
  0x56   :  { %2645 = vmatmul.msk.bf16.gmra.mxu0 %vm142_vm0, %v80_v34 }
  0x57   :  { %2653 = vmatmul.msk.bf16.gmra.mxu1 %vm142_vm0, %v80_v34 }
  0x58   :  { %2661 = vmatmul.msk.bf16.gmra.mxu2 %vm142_vm0, %v80_v34  ;;  %2669 = vmatmul.msk.bf16.gmra.mxu3 %vm142_vm0, %v80_v34 }
  0x66   :  { %2646 = vmatmul.msk.bf16.gmra.mxu0 %vm142_vm0, %v81_v49 }
  0x67   :  { %2654 = vmatmul.msk.bf16.gmra.mxu1 %vm142_vm0, %v81_v49 }
  0x68   :  { %2662 = vmatmul.msk.bf16.gmra.mxu2 %vm142_vm0, %v81_v49  ;;  %2670 = vmatmul.msk.bf16.gmra.mxu3 %vm142_vm0, %v81_v49  ;;  %v3345_v49 = vld [vmem:[#allocation2 + $0xc4] sm:$0xf] }
  0x69   :  { %v2776_v52 = vor.u32 %v3345_v49, %v2773_v50 }
  0x6b   :  { %1434 = vmatpush.bf16.msra.mxu0 %v2776_v52 }
  0x6f   :  { %1435 = vmatpush.bf16.msra.mxu0 %v2760_v28 }
  0x76   :  { %2647 = vmatmul.msk.bf16.gmra.mxu0 %vm142_vm0, %v82_v0 }
  0x77   :  { %2655 = vmatmul.msk.bf16.gmra.mxu1 %vm142_vm0, %v82_v0 }
  0x78   :  { %2663 = vmatmul.msk.bf16.gmra.mxu2 %vm142_vm0, %v82_v0  ;;  %2671 = vmatmul.msk.bf16.gmra.mxu3 %vm142_vm0, %v82_v0 }
  0x86   :  { %2648 = vmatmul.msk.bf16.gmra.mxu0 %vm142_vm0, %v83_v15 }
  0x87   :  { %2656 = vmatmul.msk.bf16.gmra.mxu1 %vm142_vm0, %v83_v15 }
  0x88   :  { %2664 = vmatmul.msk.bf16.gmra.mxu2 %vm142_vm0, %v83_v15  ;;  %2672 = vmatmul.msk.bf16.gmra.mxu3 %vm142_vm0, %v83_v15  ;;  %v3013_v15 = vld [vmem:[#allocation2 + $0x2b0] sm:$0xf0] }
  0x89   :  { %v3016_v18 = vor.u32 %v3405_v14, %v3013_v15  ;;  %v3125_v14 = vld [vmem:[#allocation2 + $0x390] sm:$0xf0] }
  0x8b   :  { %1533 = vmatpush.bf16.msra.mxu2 %v3016_v18 }
  0x93   :  { %v176_v29 = vpop.f32.mrf.mxu0 }
  0x94   :  { %v225_v31 = vpop.f32.mrf.mxu1  ;;  %v177_v33 = vadd.f32 %v176_v29, %v3756_v30  ;;  %v3437_v29 = vld [vmem:[#allocation2 + $0x3a4] sm:$0xf] }
  0x95   :  { %v226_v34 = vadd.f32 %v225_v31, %v3758_v32  ;;  %v3141_v31 = vld [vmem:[#allocation2 + $0x3b0] sm:$0xf0] }
  0x96   :  { %v363_v41 = vmax.f32 %v177_v33, 0.0 }
  0x97   :  { %v364_v44 = vmax.f32 %v226_v34, 0.0  ;;  %v3144_v34 = vor.u32 %v3437_v29, %v3141_v31 }
  0x99   :  { %1582 = vmatpush.bf16.msra.mxu3 %v3144_v34 }
  0x9b   :  { %v274_v35 = vpop.f32.mrf.mxu2  ;;  %v323_v38 = vpop.f32.mrf.mxu3 }
  0x9c   :  { %v178_v39 = vpop.f32.mrf.mxu0  ;;  %v227_v43 = vpop.f32.mrf.mxu1  ;;  %v275_v57 = vadd.f32 %v274_v35, %v3763_v45  ;;  %v324_v61 = vadd.f32 %v323_v38, %v3766_v47  ;;  %v2885_v38 = vld [vmem:[#allocation2 + $0x1b0] sm:$0xf0] }
  0x9d   :  { %v179_v42 = vadd.f32 %v178_v39, %v3756_v30  ;;  %v228_v46 = vadd.f32 %v227_v43, %v3758_v32 }
  0x9e   :  { %v365_v5 = vmax.f32 %v275_v57, 0.0  ;;  %v366_v7 = vmax.f32 %v324_v61, 0.0  ;;  %v2997_v61 = vld [vmem:[#allocation2 + $0x290] sm:$0xf0] }
  0x9f   :  { %v367_v48 = vmax.f32 %v179_v42, 0.0  ;;  %v368_v51 = vmax.f32 %v228_v46, 0.0 }
  0xa1   :  { %v3768_v55 = vpack.c.bf16 %v367_v48, %v363_v41  ;;  %v3771_v58 = vpack.c.bf16 %v368_v51, %v364_v44  ;;  %v2888_v41 = vor.u32 %v3373_v37, %v2885_v38 }
  0xa3   :  { %v276_v62 = vpop.f32.mrf.mxu2  ;;  %1245 = vmatmul.bf16.vlgmr.msrb.gmra.mxu0 %v3768_v55  ;;  %v325_v1 = vpop.f32.mrf.mxu3  ;;  %1294 = vmatmul.bf16.vlgmr.msrb.gmra.mxu1 %v3771_v58 }
  0xa4   :  { %v277_v0 = vadd.f32 %v276_v62, %v3763_v45  ;;  %v181_v2 = vpop.f32.mrf.mxu0  ;;  %v326_v3 = vadd.f32 %v325_v1, %v3766_v47  ;;  %v230_v4 = vpop.f32.mrf.mxu1  ;;  %1484 = vmatpush.bf16.msra.mxu1 %v2888_v41 }
  0xa5   :  { %v182_v11 = vadd.f32 %v181_v2, %v3756_v30  ;;  %v231_v12 = vadd.f32 %v230_v4, %v3758_v32 }
  0xa6   :  { %v369_v6 = vmax.f32 %v277_v0, 0.0  ;;  %v370_v8 = vmax.f32 %v326_v3, 0.0  ;;  %v3000_v0 = vor.u32 %v3401_v60, %v2997_v61  ;;  %v2725_v60 = vld [vmem:[#allocation2 + $0x70] sm:$0xf0] }
  0xa7   :  { %v371_v19 = vmax.f32 %v182_v11, 0.0  ;;  %v372_v22 = vmax.f32 %v231_v12, 0.0 }
  0xa8   :  { %v3778_v9 = vpack.c.bf16 %v369_v6, %v365_v5  ;;  %v3780_v10 = vpack.c.bf16 %v370_v8, %v366_v7  ;;  %1534 = vmatpush.bf16.msra.mxu2 %v3000_v0  ;;  %v3337_v7 = vld [vmem:[#allocation2 + $0x84] sm:$0xf]  ;;  %v2741_v8 = vld [vmem:[#allocation2 + $0x90] sm:$0xf0] }
  0xa9   :  { %v2744_v12 = vor.u32 %v3337_v7, %v2741_v8  ;;  %v3109_v0 = vld [vmem:[#allocation2 + $0x370] sm:$0xf0] }
  0xaa   :  { %1343 = vmatmul.bf16.vlgmr.msrb.gmra.mxu2 %v3778_v9  ;;  %1392 = vmatmul.bf16.vlgmr.msrb.gmra.mxu3 %v3780_v10 }
  0xab   :  { %v279_v13 = vpop.f32.mrf.mxu2  ;;  %v328_v16 = vpop.f32.mrf.mxu3  ;;  %1436 = vmatpush.bf16.msra.mxu0 %v2744_v12 }
  0xac   :  { %v183_v17 = vpop.f32.mrf.mxu0  ;;  %v232_v21 = vpop.f32.mrf.mxu1  ;;  %v280_v35 = vadd.f32 %v279_v13, %v3763_v45  ;;  %v329_v39 = vadd.f32 %v328_v16, %v3766_v47  ;;  %v3433_v13 = vld [vmem:[#allocation2 + $0x384] sm:$0xf] }
  0xad   :  { %v184_v20 = vadd.f32 %v183_v17, %v3756_v30  ;;  %v233_v23 = vadd.f32 %v232_v21, %v3758_v32  ;;  %v3128_v16 = vor.u32 %v3433_v13, %v3125_v14 }
  0xae   :  { %v373_v49 = vmax.f32 %v280_v35, 0.0  ;;  %v374_v51 = vmax.f32 %v329_v39, 0.0 }
  0xaf   :  { %v375_v24 = vmax.f32 %v184_v20, 0.0  ;;  %v376_v27 = vmax.f32 %v233_v23, 0.0  ;;  %v2869_v20 = vld [vmem:[#allocation2 + $0x190] sm:$0xf0]  ;;  %1583 = vmatpush.bf16.msra.mxu3 %v3128_v16 }
  0xb1   :  { %v3788_v33 = vpack.c.bf16 %v375_v24, %v371_v19  ;;  %v3791_v36 = vpack.c.bf16 %v376_v27, %v372_v22  ;;  %v3369_v19 = vld [vmem:[#allocation2 + $0x184] sm:$0xf] }
  0xb2   :  { %v2872_v23 = vor.u32 %v3369_v19, %v2869_v20 }
  0xb3   :  { %v281_v40 = vpop.f32.mrf.mxu2  ;;  %1250 = vmatmul.bf16.gmra.mxu0 %v3788_v33  ;;  %v330_v43 = vpop.f32.mrf.mxu3  ;;  %1299 = vmatmul.bf16.gmra.mxu1 %v3791_v36 }
  0xb4   :  { %v282_v42 = vadd.f32 %v281_v40, %v3763_v45  ;;  %v186_v44 = vpop.f32.mrf.mxu0  ;;  %v331_v46 = vadd.f32 %v330_v43, %v3766_v47  ;;  %v235_v48 = vpop.f32.mrf.mxu1  ;;  %1485 = vmatpush.bf16.msra.mxu1 %v2872_v23  ;;  %v2981_v43 = vld [vmem:[#allocation2 + $0x270] sm:$0xf0] }
  0xb5   :  { %v187_v56 = vadd.f32 %v186_v44, %v3756_v30  ;;  %v236_v57 = vadd.f32 %v235_v48, %v3758_v32 }
  0xb6   :  { %v377_v50 = vmax.f32 %v282_v42, 0.0  ;;  %v378_v52 = vmax.f32 %v331_v46, 0.0  ;;  %v3397_v42 = vld [vmem:[#allocation2 + $0x264] sm:$0xf] }
  0xb7   :  { %v379_v1 = vmax.f32 %v187_v56, 0.0  ;;  %v380_v4 = vmax.f32 %v236_v57, 0.0  ;;  %v2984_v48 = vor.u32 %v3397_v42, %v2981_v43 }
  0xb8   :  { %v3798_v53 = vpack.c.bf16 %v377_v50, %v373_v49  ;;  %v3800_v54 = vpack.c.bf16 %v378_v52, %v374_v51 }
  0xb9   :  { %1535 = vmatpush.bf16.msra.mxu2 %v2984_v48  ;;  %v2709_v48 = vld [vmem:[#allocation2 + $0x50] sm:$0xf0] }
  0xba   :  { %1348 = vmatmul.bf16.gmra.mxu2 %v3798_v53  ;;  %1397 = vmatmul.bf16.gmra.mxu3 %v3800_v54 }
  0xbb   :  { %v284_v59 = vpop.f32.mrf.mxu2  ;;  %v333_v62 = vpop.f32.mrf.mxu3 }
  0xbc   :  { %v188_v63 = vpop.f32.mrf.mxu0  ;;  %v237_v3 = vpop.f32.mrf.mxu1  ;;  %v285_v17 = vadd.f32 %v284_v59, %v3763_v45  ;;  %v334_v21 = vadd.f32 %v333_v62, %v3766_v47  ;;  %v3333_v59 = vld [vmem:[#allocation2 + $0x64] sm:$0xf] }
  0xbd   :  { %v189_v2 = vadd.f32 %v188_v63, %v3756_v30  ;;  %v238_v5 = vadd.f32 %v237_v3, %v3758_v32  ;;  %v2728_v62 = vor.u32 %v3333_v59, %v2725_v60  ;;  %v3429_v63 = vld [vmem:[#allocation2 + $0x364] sm:$0xf] }
  0xbe   :  { %v381_v29 = vmax.f32 %v285_v17, 0.0  ;;  %v382_v34 = vmax.f32 %v334_v21, 0.0 }
  0xbf   :  { %v383_v6 = vmax.f32 %v189_v2, 0.0  ;;  %v384_v11 = vmax.f32 %v238_v5, 0.0  ;;  %v3112_v2 = vor.u32 %v3429_v63, %v3109_v0  ;;  %1437 = vmatpush.bf16.msra.mxu0 %v2728_v62  ;;  %v3365_v5 = vld [vmem:[#allocation2 + $0x164] sm:$0xf]  ;;  %v2837_v62 = vld [vmem:[#allocation2 + $0x150] sm:$0xf0] }
  0xc1   :  { %v3808_v15 = vpack.c.bf16 %v383_v6, %v379_v1  ;;  %v3811_v18 = vpack.c.bf16 %v384_v11, %v380_v4  ;;  %v2853_v6 = vld [vmem:[#allocation2 + $0x170] sm:$0xf0]  ;;  %1584 = vmatpush.bf16.msra.mxu3 %v3112_v2 }
  0xc2   :  { %v2856_v11 = vor.u32 %v3365_v5, %v2853_v6 }
  0xc3   :  { %v286_v22 = vpop.f32.mrf.mxu2  ;;  %1255 = vmatmul.bf16.gmra.mxu0 %v3808_v15  ;;  %v335_v25 = vpop.f32.mrf.mxu3  ;;  %1304 = vmatmul.bf16.gmra.mxu1 %v3811_v18 }
  0xc4   :  { %v287_v24 = vadd.f32 %v286_v22, %v3763_v45  ;;  %v191_v26 = vpop.f32.mrf.mxu0  ;;  %v336_v27 = vadd.f32 %v335_v25, %v3766_v47  ;;  %v240_v28 = vpop.f32.mrf.mxu1  ;;  %1486 = vmatpush.bf16.msra.mxu1 %v2856_v11 }
  0xc5   :  { %v192_v39 = vadd.f32 %v191_v26, %v3756_v30  ;;  %v241_v40 = vadd.f32 %v240_v28, %v3758_v32  ;;  %v3393_v28 = vld [vmem:[#allocation2 + $0x244] sm:$0xf] }
  0xc6   :  { %v385_v31 = vmax.f32 %v287_v24, 0.0  ;;  %v386_v35 = vmax.f32 %v336_v27, 0.0 }
  0xc7   :  { %v387_v49 = vmax.f32 %v192_v39, 0.0  ;;  %v388_v52 = vmax.f32 %v241_v40, 0.0 }
  0xc8   :  { %v3818_v37 = vpack.c.bf16 %v385_v31, %v381_v29  ;;  %v3820_v38 = vpack.c.bf16 %v386_v35, %v382_v34  ;;  %v2965_v29 = vld [vmem:[#allocation2 + $0x250] sm:$0xf0] }
  0xc9   :  { %v2968_v35 = vor.u32 %v3393_v28, %v2965_v29 }
  0xca   :  { %1353 = vmatmul.bf16.gmra.mxu2 %v3818_v37  ;;  %1402 = vmatmul.bf16.gmra.mxu3 %v3820_v38 }
  0xcb   :  { %v289_v41 = vpop.f32.mrf.mxu2  ;;  %v338_v44 = vpop.f32.mrf.mxu3  ;;  %1536 = vmatpush.bf16.msra.mxu2 %v2968_v35 }
  0xcc   :  { %v193_v46 = vpop.f32.mrf.mxu0  ;;  %v242_v51 = vpop.f32.mrf.mxu1  ;;  %v290_v3 = vadd.f32 %v289_v41, %v3763_v45  ;;  %v339_v7 = vadd.f32 %v338_v44, %v3766_v47 }
  0xcd   :  { %v194_v50 = vadd.f32 %v193_v46, %v3756_v30  ;;  %v243_v56 = vadd.f32 %v242_v51, %v3758_v32  ;;  %v3329_v46 = vld [vmem:[#allocation2 + $0x44] sm:$0xf] }
  0xce   :  { %v389_v19 = vmax.f32 %v290_v3, 0.0  ;;  %v390_v21 = vmax.f32 %v339_v7, 0.0  ;;  %v3425_v51 = vld [vmem:[#allocation2 + $0x344] sm:$0xf] }
  0xcf   :  { %v391_v57 = vmax.f32 %v194_v50, 0.0  ;;  %v392_v61 = vmax.f32 %v243_v56, 0.0  ;;  %v2712_v50 = vor.u32 %v3329_v46, %v2709_v48  ;;  %v3421_v46 = vld [vmem:[#allocation2 + $0x324] sm:$0xf]  ;;  %v3077_v48 = vld [vmem:[#allocation2 + $0x330] sm:$0xf0] }
  0xd1   :  { %v3828_v1 = vpack.c.bf16 %v391_v57, %v387_v49  ;;  %v3831_v4 = vpack.c.bf16 %v392_v61, %v388_v52  ;;  %v3093_v52 = vld [vmem:[#allocation2 + $0x350] sm:$0xf0]  ;;  %1438 = vmatpush.bf16.msra.mxu0 %v2712_v50  ;;  %v3361_v61 = vld [vmem:[#allocation2 + $0x144] sm:$0xf]  ;;  %v3080_v50 = vor.u32 %v3421_v46, %v3077_v48 }
  0xd2   :  { %v3096_v57 = vor.u32 %v3425_v51, %v3093_v52  ;;  %v2840_v2 = vor.u32 %v3361_v61, %v2837_v62  ;;  %v2805_v46 = vld [vmem:[#allocation2 + $0x110] sm:$0xf0] }
  0xd3   :  { %v291_v8 = vpop.f32.mrf.mxu2  ;;  %1260 = vmatmul.bf16.gmra.mxu0 %v3828_v1  ;;  %v340_v13 = vpop.f32.mrf.mxu3  ;;  %1309 = vmatmul.bf16.gmra.mxu1 %v3831_v4 }
  0xd4   :  { %v292_v12 = vadd.f32 %v291_v8, %v3763_v45  ;;  %v196_v14 = vpop.f32.mrf.mxu0  ;;  %v341_v16 = vadd.f32 %v340_v13, %v3766_v47  ;;  %v245_v17 = vpop.f32.mrf.mxu1  ;;  %1585 = vmatpush.bf16.msra.mxu3 %v3096_v57  ;;  %1487 = vmatpush.bf16.msra.mxu1 %v2840_v2  ;;  %v3357_v57 = vld [vmem:[#allocation2 + $0x124] sm:$0xf] }
  0xd5   :  { %v197_v25 = vadd.f32 %v196_v14, %v3756_v30  ;;  %v246_v26 = vadd.f32 %v245_v17, %v3758_v32 }
  0xd6   :  { %v393_v20 = vmax.f32 %v292_v12, 0.0  ;;  %v394_v22 = vmax.f32 %v341_v16, 0.0 }
  0xd7   :  { %v395_v39 = vmax.f32 %v197_v25, 0.0  ;;  %v396_v42 = vmax.f32 %v246_v26, 0.0  ;;  %v2949_v25 = vld [vmem:[#allocation2 + $0x230] sm:$0xf0] }
  0xd8   :  { %v3838_v23 = vpack.c.bf16 %v393_v20, %v389_v19  ;;  %v3840_v24 = vpack.c.bf16 %v394_v22, %v390_v21  ;;  %v3389_v22 = vld [vmem:[#allocation2 + $0x224] sm:$0xf]  ;;  %1586 = vmatpush.bf16.msra.mxu3 %v3080_v50 }
  0xd9   :  { %v2952_v28 = vor.u32 %v3389_v22, %v2949_v25  ;;  %v3385_v22 = vld [vmem:[#allocation2 + $0x204] sm:$0xf]  ;;  %v2933_v25 = vld [vmem:[#allocation2 + $0x210] sm:$0xf0] }
  0xda   :  { %1358 = vmatmul.bf16.gmra.mxu2 %v3838_v23  ;;  %1407 = vmatmul.bf16.gmra.mxu3 %v3840_v24 }
  0xdb   :  { %v294_v27 = vpop.f32.mrf.mxu2  ;;  %v343_v31 = vpop.f32.mrf.mxu3  ;;  %1537 = vmatpush.bf16.msra.mxu2 %v2952_v28 }
  0xdc   :  { %v198_v34 = vpop.f32.mrf.mxu0  ;;  %v247_v41 = vpop.f32.mrf.mxu1  ;;  %v295_v59 = vadd.f32 %v294_v27, %v3763_v45  ;;  %v344_v63 = vadd.f32 %v343_v31, %v3766_v47 }
  0xdd   :  { %v199_v40 = vadd.f32 %v198_v34, %v3756_v30  ;;  %v248_v43 = vadd.f32 %v247_v41, %v3758_v32  ;;  %v3325_v41 = vld [vmem:[#allocation2 + $0x24] sm:$0xf] }
  0xde   :  { %v397_v11 = vmax.f32 %v295_v59, 0.0  ;;  %v398_v13 = vmax.f32 %v344_v63, 0.0  ;;  %v2821_v59 = vld [vmem:[#allocation2 + $0x130] sm:$0xf0] }
  0xdf   :  { %v399_v44 = vmax.f32 %v199_v40, 0.0  ;;  %v400_v49 = vmax.f32 %v248_v43, 0.0  ;;  %v2824_v63 = vor.u32 %v3357_v57, %v2821_v59 }
  0xe1   :  { %v3848_v56 = vpack.c.bf16 %v399_v44, %v395_v39  ;;  %v3851_v60 = vpack.c.bf16 %v400_v49, %v396_v42  ;;  %v2693_v42 = vld [vmem:[#allocation2 + $0x30] sm:$0xf0]  ;;  %1488 = vmatpush.bf16.msra.mxu1 %v2824_v63 }
  0xe2   :  { %v2696_v44 = vor.u32 %v3325_v41, %v2693_v42 }
  0xe3   :  { %v296_v0 = vpop.f32.mrf.mxu2  ;;  %1265 = vmatmul.bf16.gmra.mxu0 %v3848_v56  ;;  %v345_v5 = vpop.f32.mrf.mxu3  ;;  %1314 = vmatmul.bf16.gmra.mxu1 %v3851_v60 }
  0xe4   :  { %v297_v3 = vadd.f32 %v296_v0, %v3763_v45  ;;  %v201_v6 = vpop.f32.mrf.mxu0  ;;  %v346_v7 = vadd.f32 %v345_v5, %v3766_v47  ;;  %v250_v8 = vpop.f32.mrf.mxu1  ;;  %1439 = vmatpush.bf16.msra.mxu0 %v2696_v44  ;;  %v3353_v44 = vld [vmem:[#allocation2 + $0x104] sm:$0xf] }
  0xe5   :  { %v202_v19 = vadd.f32 %v201_v6, %v3756_v30  ;;  %v251_v20 = vadd.f32 %v250_v8, %v3758_v32 }
  0xe6   :  { %v401_v12 = vmax.f32 %v297_v3, 0.0  ;;  %v402_v14 = vmax.f32 %v346_v7, 0.0 }
  0xe7   :  { %v403_v29 = vmax.f32 %v202_v19, 0.0  ;;  %v404_v35 = vmax.f32 %v251_v20, 0.0 }
  0xe8   :  { %v3858_v16 = vpack.c.bf16 %v401_v12, %v397_v11  ;;  %v3860_v17 = vpack.c.bf16 %v402_v14, %v398_v13 }
  0xea   :  { %1363 = vmatmul.bf16.gmra.mxu2 %v3858_v16  ;;  %1412 = vmatmul.bf16.gmra.mxu3 %v3860_v17 }
  0xeb   :  { %v299_v21 = vpop.f32.mrf.mxu2  ;;  %v348_v26 = vpop.f32.mrf.mxu3 }
  0xec   :  { %v203_v27 = vpop.f32.mrf.mxu0  ;;  %v252_v34 = vpop.f32.mrf.mxu1  ;;  %v300_v51 = vadd.f32 %v299_v21, %v3763_v45  ;;  %v349_v61 = vadd.f32 %v348_v26, %v3766_v47  ;;  %v3321_v26 = vld [vmem:[#allocation2 + $0x4] sm:$0xf] }
  0xed   :  { %v204_v31 = vadd.f32 %v203_v27, %v3756_v30  ;;  %v253_v39 = vadd.f32 %v252_v34, %v3758_v32  ;;  %v3417_v34 = vld [vmem:[#allocation2 + $0x304] sm:$0xf] }
  0xee   :  { %v405_v7 = vmax.f32 %v300_v51, 0.0  ;;  %v406_v11 = vmax.f32 %v349_v61, 0.0  ;;  %v2808_v51 = vor.u32 %v3353_v44, %v2805_v46 }
  0xef   :  { %v407_v40 = vmax.f32 %v204_v31, 0.0  ;;  %v408_v43 = vmax.f32 %v253_v39, 0.0  ;;  %v2677_v31 = vld [vmem:[#allocation2 + $0x10] sm:$0xf0] }
  0xf0   :  { %v2680_v42 = vor.u32 %v3321_v26, %v2677_v31  ;;  %1489 = vmatpush.bf16.msra.mxu1 %v2808_v51  ;;  %v2795_v31 = vld [vmem:[#allocation2 + $0xe8] sm:$0xf] }
  0xf1   :  { %v3868_v49 = vpack.c.bf16 %v407_v40, %v403_v29  ;;  %v3871_v52 = vpack.c.bf16 %v408_v43, %v404_v35  ;;  %v2936_v29 = vor.u32 %v3385_v22, %v2933_v25  ;;  %v3061_v35 = vld [vmem:[#allocation2 + $0x310] sm:$0xf0] }
  0xf2   :  { %v3064_v43 = vor.u32 %v3417_v34, %v3061_v35  ;;  %1440 = vmatpush.bf16.msra.mxu0 %v2680_v42  ;;  %v3448_v42 = vld [vmem:[#allocation2 + $0x3f4] sm:$0xf0] }
  0xf3   :  { %v301_v62 = vpop.f32.mrf.mxu2  ;;  %1270 = vmatmul.bf16.gmra.mxu0 %v3868_v49  ;;  %v350_v2 = vpop.f32.mrf.mxu3  ;;  %1319 = vmatmul.bf16.gmra.mxu1 %v3871_v52 }
  0xf4   :  { %v302_v0 = vadd.f32 %v301_v62, %v3763_v45  ;;  %v206_v3 = vpop.f32.mrf.mxu0  ;;  %v351_v5 = vadd.f32 %v350_v2, %v3766_v47  ;;  %v255_v6 = vpop.f32.mrf.mxu1  ;;  %1538 = vmatpush.bf16.msra.mxu2 %v2936_v29  ;;  %1587 = vmatpush.bf16.msra.mxu3 %v3064_v43  ;;  %v3416_v29 = vld [vmem:[#allocation2 + $0x2f4] sm:$0xf0] }
  0xf5   :  { %v207_v19 = vadd.f32 %v206_v3, %v3756_v30  ;;  %v256_v20 = vadd.f32 %v255_v6, %v3758_v32 }
  0xf6   :  { %v409_v8 = vmax.f32 %v302_v0, 0.0  ;;  %v410_v12 = vmax.f32 %v351_v5, 0.0 }
  0xf7   :  { %v411_v39 = vmax.f32 %v207_v19, 0.0  ;;  %v412_v48 = vmax.f32 %v256_v20, 0.0 }
  0xf8   :  { %v3878_v13 = vpack.c.bf16 %v409_v8, %v405_v7  ;;  %v3880_v14 = vpack.c.bf16 %v410_v12, %v406_v11 }
  0xfa   :  { %1368 = vmatmul.bf16.gmra.mxu2 %v3878_v13  ;;  %1417 = vmatmul.bf16.gmra.mxu3 %v3880_v14 }
  0xfb   :  { %v304_v21 = vpop.f32.mrf.mxu2  ;;  %v353_v27 = vpop.f32.mrf.mxu3 }
  0xfc   :  { %v208_v28 = vpop.f32.mrf.mxu0  ;;  %v257_v41 = vpop.f32.mrf.mxu1  ;;  %v305_v62 = vadd.f32 %v304_v21, %v3763_v45  ;;  %v354_v0 = vadd.f32 %v353_v27, %v3766_v47 }
  0xfd   :  { %v209_v40 = vadd.f32 %v208_v28, %v3756_v30  ;;  %v258_v50 = vadd.f32 %v257_v41, %v3758_v32  ;;  %v3051_v28 = vld [vmem:[#allocation2 + $0x2e8] sm:$0xf] }
  0xfe   :  { %v413_v11 = vmax.f32 %v305_v62, 0.0  ;;  %v414_v19 = vmax.f32 %v354_v0, 0.0  ;;  %v3179_v41 = vld [vmem:[#allocation2 + $0x3e8] sm:$0xf] }
  0xff   :  { %v415_v57 = vmax.f32 %v209_v40, 0.0  ;;  %v416_v59 = vmax.f32 %v258_v50, 0.0  ;;  %v3352_v40 = vld [vmem:[#allocation2 + $0xf4] sm:$0xf0]  ;;  %v3180_v50 = vor.u32 %v3448_v42, %v3179_v41 }
 0x100   :  { %v3444_v41 = vld [vmem:[#allocation2 + $0x3d4] sm:$0xf0] }
 0x101   :  { %v3888_v61 = vpack.c.bf16 %v415_v57, %v411_v39  ;;  %v3891_v63 = vpack.c.bf16 %v416_v59, %v412_v48  ;;  %v3052_v39 = vor.u32 %v3416_v29, %v3051_v28  ;;  %v2796_v48 = vor.u32 %v3352_v40, %v2795_v31  ;;  %1776 = vmatpush.bf16.msrb.mxu3 %v3180_v50  ;;  %v3923_v28 = vld [vmem:[%s4206_s4] sm:$0xf]  ;;  %v3412_v31 = vld [vmem:[#allocation2 + $0x2d4] sm:$0xf0]  ;;  %v3163_v40 = vld [vmem:[#allocation2 + $0x3c8] sm:$0xf] }
 0x102   :  { %v2907_v50 = vld [vmem:[#allocation2 + $0x1c8] sm:$0xf] }
 0x103   :  { %v306_v2 = vpop.f32.mrf.mxu2  ;;  %1275 = vmatmul.bf16.gmra.mxu0 %v3888_v61  ;;  %v355_v5 = vpop.f32.mrf.mxu3  ;;  %1324 = vmatmul.bf16.gmra.mxu1 %v3891_v63 }
 0x104   :  { %v307_v3 = vadd.f32 %v306_v2, %v3763_v45  ;;  %v211_v6 = vpop.f32.mrf.mxu0  ;;  %v356_v7 = vadd.f32 %v355_v5, %v3766_v47  ;;  %v260_v8 = vpop.f32.mrf.mxu1  ;;  %1727 = vmatpush.bf16.msrb.mxu2 %v3052_v39  ;;  %1629 = vmatpush.bf16.msrb.mxu0 %v2796_v48  ;;  %v2923_v5 = vld [vmem:[#allocation2 + $0x1e8] sm:$0xf]  ;;  %v3348_v39 = vld [vmem:[#allocation2 + $0xd4] sm:$0xf0] }
 0x105   :  { %v212_v25 = vadd.f32 %v211_v6, %v3756_v30  ;;  %v261_v26 = vadd.f32 %v260_v8, %v3758_v32  ;;  %v3384_v6 = vld [vmem:[#allocation2 + $0x1f4] sm:$0xf0] }
 0x106   :  { %v417_v12 = vmax.f32 %v307_v3, 0.0  ;;  %v418_v20 = vmax.f32 %v356_v7, 0.0  ;;  %v2924_v8 = vor.u32 %v3384_v6, %v2923_v5 }
 0x107   :  { %v419_v43 = vmax.f32 %v212_v25, 0.0  ;;  %v420_v51 = vmax.f32 %v261_v26, 0.0 }
 0x108   :  { %v3898_v21 = vpack.c.bf16 %v417_v12, %v413_v11  ;;  %v3900_v22 = vpack.c.bf16 %v418_v20, %v414_v19  ;;  %1678 = vmatpush.bf16.msrb.mxu1 %v2924_v8  ;;  %v2763_v8 = vld [vmem:[#allocation2 + $0xa8] sm:$0xf] }
 0x10a   :  { %1373 = vmatmul.bf16.gmra.mxu2 %v3898_v21  ;;  %1422 = vmatmul.bf16.gmra.mxu3 %v3900_v22 }
 0x10b   :  { %v309_v27 = vpop.f32.mrf.mxu2  ;;  %v358_v34 = vpop.f32.mrf.mxu3 }
 0x10c   :  { %v213_v35 = vpop.f32.mrf.mxu0  ;;  %v262_v46 = vpop.f32.mrf.mxu1  ;;  %v310_v2 = vadd.f32 %v309_v27, %v3763_v45 }
 0x10d   :  { %v214_v44 = vadd.f32 %v213_v35, %v3756_v30  ;;  %v263_v57 = vadd.f32 %v262_v46, %v3758_v32  ;;  %v359_v30 = vadd.f32 %v358_v34, %v3766_v47  ;;  %v2779_v34 = vld [vmem:[#allocation2 + $0xc8] sm:$0xf] }
 0x10e   :  { %v421_v19 = vmax.f32 %v310_v2, 0.0  ;;  %v2780_v42 = vor.u32 %v3348_v39, %v2779_v34 }
 0x10f   :  { %v423_v59 = vmax.f32 %v214_v44, 0.0  ;;  %v424_v62 = vmax.f32 %v263_v57, 0.0  ;;  %v422_v25 = vmax.f32 %v359_v30, 0.0  ;;  %v3019_v30 = vld [vmem:[#allocation2 + $0x2a8] sm:$0xf] }
 0x110   :  { %1630 = vmatpush.bf16.msrb.mxu0 %v2780_v42  ;;  %v3376_v42 = vld [vmem:[#allocation2 + $0x1b4] sm:$0xf0] }
 0x111   :  { %v3908_v0 = vpack.c.bf16 %v423_v59, %v419_v43  ;;  %v3911_v3 = vpack.c.bf16 %v424_v62, %v420_v51  ;;  %v3164_v43 = vor.u32 %v3444_v41, %v3163_v40  ;;  %v3380_v51 = vld [vmem:[#allocation2 + $0x1d4] sm:$0xf0]  ;;  %v2891_v41 = vld [vmem:[#allocation2 + $0x1a8] sm:$0xf] }
 0x112   :  { %v2908_v59 = vor.u32 %v3380_v51, %v2907_v50 }
 0x113   :  { %v311_v7 = vpop.f32.mrf.mxu2  ;;  %1280 = vmatmul.bf16.gmra.mxu0 %v3908_v0  ;;  %v360_v11 = vpop.f32.mrf.mxu3  ;;  %1329 = vmatmul.bf16.gmra.mxu1 %v3911_v3 }
 0x114   :  { %v312_v32 = vadd.f32 %v311_v7, %v3763_v45  ;;  %v361_v12 = vadd.f32 %v360_v11, %v3766_v47  ;;  %v3930_v45 = vperm.slane %v3923_v28, 0  ;;  %v3035_v47 = vld [vmem:[#allocation2 + $0x2c8] sm:$0xf]  ;;  %1777 = vmatpush.bf16.msrb.mxu3 %v3164_v43  ;;  %1679 = vmatpush.bf16.msrb.mxu1 %v2908_v59  ;;  %v3408_v7 = vld [vmem:[#allocation2 + $0x2b4] sm:$0xf0] }
 0x115   :  { %v3036_v35 = vor.u32 %v3412_v31, %v3035_v47  ;;  %v3344_v11 = vld [vmem:[#allocation2 + $0xb4] sm:$0xf0] }
 0x116   :  { %v425_v20 = vmax.f32 %v312_v32, 0.0  ;;  %v426_v26 = vmax.f32 %v361_v12, 0.0  ;;  %v3020_v32 = vor.u32 %v3408_v7, %v3019_v30  ;;  %v3147_v12 = vld [vmem:[#allocation2 + $0x3a8] sm:$0xf] }
 0x117   :  { %1728 = vmatpush.bf16.msrb.mxu2 %v3036_v35  ;;  %v3003_v7 = vld [vmem:[#allocation2 + $0x288] sm:$0xf] }
 0x118   :  { %v3918_v27 = vpack.c.bf16 %v425_v20, %v421_v19  ;;  %v3925_v29 = vpack.c.bf16 %v426_v26, %v422_v25  ;;  %v3440_v19 = vld [vmem:[#allocation2 + $0x3b4] sm:$0xf0]  ;;  %v2764_v25 = vor.u32 %v3344_v11, %v2763_v8 }
 0x119   :  { %v3148_v26 = vor.u32 %v3440_v19, %v3147_v12  ;;  %v3404_v8 = vld [vmem:[#allocation2 + $0x294] sm:$0xf0]  ;;  %v3131_v19 = vld [vmem:[#allocation2 + $0x388] sm:$0xf] }
 0x11a   :  { %1378 = vmatmul.bf16.gmra.mxu2 %v3918_v27  ;;  %1427 = vmatmul.bf16.gmra.mxu3 %v3925_v29  ;;  %v3004_v12 = vor.u32 %v3404_v8, %v3003_v7 }
 0x11b   :  { %1729 = vmatpush.bf16.msrb.mxu2 %v3020_v32  ;;  %1631 = vmatpush.bf16.msrb.mxu0 %v2764_v25  ;;  %v2747_v32 = vld [vmem:[#allocation2 + $0x88] sm:$0xf] }
 0x11c   :  { %1778 = vmatpush.bf16.msrb.mxu3 %v3148_v26 }
 0x11f   :  { %1730 = vmatpush.bf16.msrb.mxu2 %v3004_v12  ;;  %v3400_v12 = vld [vmem:[#allocation2 + $0x274] sm:$0xf0] }
 0x120   :  { %v1246_v44 = vpop.f32.mrf.mxu0  ;;  %v1295_v48 = vpop.f32.mrf.mxu1 }
 0x121   :  { %v1247_v46 = vadd.f32 %v1246_v44, %v3930_v45  ;;  %v2892_v44 = vor.u32 %v3376_v42, %v2891_v41  ;;  %v2875_v42 = vld [vmem:[#allocation2 + $0x188] sm:$0xf] }
 0x123   :  { %v1296_v57 = vadd.f32 %v1295_v48, %v1247_v46  ;;  %1441 = vmatmul.bf16.vlgmr.msra.gmra.mxu0 %v3768_v55  ;;  %1490 = vmatmul.bf16.vlgmr.msra.gmra.mxu1 %v3771_v58 }
 0x124   :  { %1680 = vmatpush.bf16.msrb.mxu1 %v2892_v44  ;;  %v3372_v44 = vld [vmem:[#allocation2 + $0x194] sm:$0xf0] }
 0x128   :  { %v1248_v62 = vpop.f32.mrf.mxu0  ;;  %v1297_v5 = vpop.f32.mrf.mxu1 }
 0x129   :  { %v1249_v2 = vadd.f32 %v1248_v62, %v3930_v45 }
 0x12a   :  { %1539 = vmatmul.bf16.vlgmr.msra.gmra.mxu2 %v3778_v9  ;;  %1588 = vmatmul.bf16.vlgmr.msra.gmra.mxu3 %v3780_v10 }
 0x12b   :  { %v1298_v6 = vadd.f32 %v1297_v5, %v1249_v2 }
 0x12d   :  { %v1344_v20 = vpop.f32.mrf.mxu2  ;;  %v1393_v31 = vpop.f32.mrf.mxu3 }
 0x12e   :  { %v1345_v47 = vadd.f32 %v1344_v20, %v1296_v57  ;;  %v3436_v20 = vld [vmem:[#allocation2 + $0x394] sm:$0xf0] }
 0x130   :  { %v1394_v34 = vadd.f32 %v1393_v31, %v1345_v47  ;;  %v1251_v35 = vpop.f32.mrf.mxu0  ;;  %v1300_v40 = vpop.f32.mrf.mxu1  ;;  %v3132_v47 = vor.u32 %v3436_v20, %v3131_v19  ;;  %v3336_v20 = vld [vmem:[#allocation2 + $0x74] sm:$0xf0] }
 0x131   :  { %v1252_v39 = vadd.f32 %v1251_v35, %v3930_v45 }
 0x132   :  { %v2021_v2 = vmax.f32 %v1394_v34, 0.0  ;;  %1779 = vmatpush.bf16.msrb.mxu3 %v3132_v47 }
 0x133   :  { %v1301_v43 = vadd.f32 %v1300_v40, %v1252_v39  ;;  %1446 = vmatmul.bf16.gmra.mxu0 %v3788_v33  ;;  %1495 = vmatmul.bf16.gmra.mxu1 %v3791_v36 }
 0x135   :  { %v1346_v46 = vpop.f32.mrf.mxu2  ;;  %v1395_v50 = vpop.f32.mrf.mxu3 }
 0x136   :  { %v1347_v48 = vadd.f32 %v1346_v46, %v1298_v6  ;;  %v3340_v6 = vld [vmem:[#allocation2 + $0x94] sm:$0xf0] }
 0x137   :  { %v2748_v26 = vor.u32 %v3340_v6, %v2747_v32  ;;  %v2987_v32 = vld [vmem:[#allocation2 + $0x268] sm:$0xf] }
 0x138   :  { %v1396_v51 = vadd.f32 %v1395_v50, %v1347_v48  ;;  %v1253_v57 = vpop.f32.mrf.mxu0  ;;  %v1302_v62 = vpop.f32.mrf.mxu1  ;;  %v2876_v48 = vor.u32 %v3372_v44, %v2875_v42  ;;  %v2731_v6 = vld [vmem:[#allocation2 + $0x68] sm:$0xf]  ;;  %v2988_v19 = vor.u32 %v3400_v12, %v2987_v32 }
 0x139   :  { %v1254_v59 = vadd.f32 %v1253_v57, %v3930_v45  ;;  %1632 = vmatpush.bf16.msrb.mxu0 %v2748_v26 }
 0x13a   :  { %v2025_v5 = vmax.f32 %v1396_v51, 0.0  ;;  %1544 = vmatmul.bf16.gmra.mxu2 %v3798_v53  ;;  %1593 = vmatmul.bf16.gmra.mxu3 %v3800_v54 }
 0x13b   :  { %v1303_v30 = vadd.f32 %v1302_v62, %v1254_v59  ;;  %1681 = vmatpush.bf16.msrb.mxu1 %v2876_v48  ;;  %1731 = vmatpush.bf16.msrb.mxu2 %v2988_v19  ;;  %v2859_v48 = vld [vmem:[#allocation2 + $0x168] sm:$0xf] }
 0x13c   :  { %v3944_v11 = vpack.c.bf16 %v2025_v5, %v2021_v2  ;;  %v2971_v19 = vld [vmem:[#allocation2 + $0x248] sm:$0xf] }
 0x13d   :  { %v1349_v25 = vpop.f32.mrf.mxu2  ;;  %v1398_v34 = vpop.f32.mrf.mxu3 }
 0x13e   :  { %v1350_v31 = vadd.f32 %v1349_v25, %v1301_v43  ;;  %v3115_v25 = vld [vmem:[#allocation2 + $0x368] sm:$0xf] }
 0x140   :  { %v1399_v35 = vadd.f32 %v1398_v34, %v1350_v31  ;;  %v1256_v39 = vpop.f32.mrf.mxu0  ;;  %v1305_v41 = vpop.f32.mrf.mxu1  ;;  %v2732_v31 = vor.u32 %v3336_v20, %v2731_v6  ;;  %v3396_v20 = vld [vmem:[#allocation2 + $0x254] sm:$0xf0] }
 0x141   :  { %v1257_v40 = vadd.f32 %v1256_v39, %v3930_v45 }
 0x142   :  { %v2029_v5 = vmax.f32 %v1399_v35, 0.0  ;;  %1633 = vmatpush.bf16.msrb.mxu0 %v2732_v31  ;;  %v3099_v31 = vld [vmem:[#allocation2 + $0x348] sm:$0xf] }
 0x143   :  { %v1306_v46 = vadd.f32 %v1305_v41, %v1257_v40  ;;  %1451 = vmatmul.bf16.gmra.mxu0 %v3808_v15  ;;  %1500 = vmatmul.bf16.gmra.mxu1 %v3811_v18 }
 0x145   :  { %v1351_v50 = vpop.f32.mrf.mxu2  ;;  %v1400_v51 = vpop.f32.mrf.mxu3 }
 0x146   :  { %v1352_v43 = vadd.f32 %v1351_v50, %v1303_v30  ;;  %v3432_v30 = vld [vmem:[#allocation2 + $0x374] sm:$0xf0] }
 0x147   :  { %v3116_v34 = vor.u32 %v3432_v30, %v3115_v25  ;;  %v3368_v50 = vld [vmem:[#allocation2 + $0x174] sm:$0xf0]  ;;  %v2715_v25 = vld [vmem:[#allocation2 + $0x48] sm:$0xf]  ;;  %v2972_v30 = vor.u32 %v3396_v20, %v2971_v19 }
 0x148   :  { %v1401_v57 = vadd.f32 %v1400_v51, %v1352_v43  ;;  %v1258_v59 = vpop.f32.mrf.mxu0  ;;  %v1307_v2 = vpop.f32.mrf.mxu1  ;;  %v2860_v51 = vor.u32 %v3368_v50, %v2859_v48 }
 0x149   :  { %v1259_v62 = vadd.f32 %v1258_v59, %v3930_v45  ;;  %1780 = vmatpush.bf16.msrb.mxu3 %v3116_v34  ;;  %1732 = vmatpush.bf16.msrb.mxu2 %v2972_v30 }
 0x14a   :  { %v2033_v7 = vmax.f32 %v1401_v57, 0.0  ;;  %1549 = vmatmul.bf16.gmra.mxu2 %v3818_v37  ;;  %1598 = vmatmul.bf16.gmra.mxu3 %v3820_v38 }
 0x14b   :  { %v1308_v8 = vadd.f32 %v1307_v2, %v1259_v62  ;;  %1682 = vmatpush.bf16.msrb.mxu1 %v2860_v51 }
 0x14c   :  { %v3952_v26 = vpack.c.bf16 %v2033_v7, %v2029_v5 }
 0x14d   :  { %v1354_v47 = vpop.f32.mrf.mxu2  ;;  %v1403_v35 = vpop.f32.mrf.mxu3 }
 0x14e   :  { %v1355_v39 = vadd.f32 %v1354_v47, %v1306_v46  ;;  %v3332_v47 = vld [vmem:[#allocation2 + $0x54] sm:$0xf0] }
 0x150   :  { %v1404_v40 = vadd.f32 %v1403_v35, %v1355_v39  ;;  %v1261_v41 = vpop.f32.mrf.mxu0  ;;  %v1310_v44 = vpop.f32.mrf.mxu1  ;;  %v2716_v35 = vor.u32 %v3332_v47, %v2715_v25  ;;  %v2955_v47 = vld [vmem:[#allocation2 + $0x228] sm:$0xf] }
 0x151   :  { %v1262_v42 = vadd.f32 %v1261_v41, %v3930_v45 }
 0x152   :  { %v2037_v32 = vmax.f32 %v1404_v40, 0.0  ;;  %1634 = vmatpush.bf16.msrb.mxu0 %v2716_v35  ;;  %v3328_v35 = vld [vmem:[#allocation2 + $0x34] sm:$0xf0] }
 0x153   :  { %v1311_v43 = vadd.f32 %v1310_v44, %v1262_v42  ;;  %1456 = vmatmul.bf16.gmra.mxu0 %v3828_v1  ;;  %1505 = vmatmul.bf16.gmra.mxu1 %v3831_v4 }
 0x155   :  { %v1356_v57 = vpop.f32.mrf.mxu2  ;;  %v1405_v59 = vpop.f32.mrf.mxu3 }
 0x156   :  { %v1357_v46 = vadd.f32 %v1356_v57, %v1308_v8  ;;  %v3428_v8 = vld [vmem:[#allocation2 + $0x354] sm:$0xf0]  ;;  %v2843_v57 = vld [vmem:[#allocation2 + $0x148] sm:$0xf] }
 0x157   :  { %v3100_v41 = vor.u32 %v3428_v8, %v3099_v31  ;;  %v3392_v31 = vld [vmem:[#allocation2 + $0x234] sm:$0xf0]  ;;  %v2699_v8 = vld [vmem:[#allocation2 + $0x28] sm:$0xf] }
 0x158   :  { %v1406_v62 = vadd.f32 %v1405_v59, %v1357_v46  ;;  %v1263_v2 = vpop.f32.mrf.mxu0  ;;  %v1312_v7 = vpop.f32.mrf.mxu1  ;;  %v3364_v46 = vld [vmem:[#allocation2 + $0x154] sm:$0xf0] }
 0x159   :  { %v1264_v5 = vadd.f32 %v1263_v2, %v3930_v45  ;;  %1781 = vmatpush.bf16.msrb.mxu3 %v3100_v41  ;;  %v3083_v41 = vld [vmem:[#allocation2 + $0x328] sm:$0xf] }
 0x15a   :  { %v2041_v12 = vmax.f32 %v1406_v62, 0.0  ;;  %1554 = vmatmul.bf16.gmra.mxu2 %v3838_v23  ;;  %1603 = vmatmul.bf16.gmra.mxu3 %v3840_v24  ;;  %v2844_v62 = vor.u32 %v3364_v46, %v2843_v57 }
 0x15b   :  { %v1313_v6 = vadd.f32 %v1312_v7, %v1264_v5 }
 0x15c   :  { %v3960_v34 = vpack.c.bf16 %v2041_v12, %v2037_v32  ;;  %1683 = vmatpush.bf16.msrb.mxu1 %v2844_v62 }
 0x15d   :  { %v1359_v39 = vpop.f32.mrf.mxu2  ;;  %v1408_v40 = vpop.f32.mrf.mxu3 }
 0x15e   :  { %v1360_v42 = vadd.f32 %v1359_v39, %v1311_v43  ;;  %v2956_v39 = vor.u32 %v3392_v31, %v2955_v47 }
 0x160   :  { %v1409_v44 = vadd.f32 %v1408_v40, %v1360_v42  ;;  %v1266_v48 = vpop.f32.mrf.mxu0  ;;  %v1315_v51 = vpop.f32.mrf.mxu1  ;;  %1733 = vmatpush.bf16.msrb.mxu2 %v2956_v39 }
 0x161   :  { %v1267_v50 = vadd.f32 %v1266_v48, %v3930_v45  ;;  %v2700_v48 = vor.u32 %v3328_v35, %v2699_v8 }
 0x162   :  { %v2045_v20 = vmax.f32 %v1409_v44, 0.0 }
 0x163   :  { %v1316_v59 = vadd.f32 %v1315_v51, %v1267_v50  ;;  %1461 = vmatmul.bf16.gmra.mxu0 %v3848_v56  ;;  %1510 = vmatmul.bf16.gmra.mxu1 %v3851_v60 }
 0x164   :  { %1635 = vmatpush.bf16.msrb.mxu0 %v2700_v48 }
 0x165   :  { %v1361_v2 = vpop.f32.mrf.mxu2  ;;  %v1410_v5 = vpop.f32.mrf.mxu3 }
 0x166   :  { %v1362_v43 = vadd.f32 %v1361_v2, %v1313_v6  ;;  %v3424_v6 = vld [vmem:[#allocation2 + $0x334] sm:$0xf0] }
 0x167   :  { %v3084_v50 = vor.u32 %v3424_v6, %v3083_v41  ;;  %v2939_v41 = vld [vmem:[#allocation2 + $0x208] sm:$0xf]  ;;  %v3388_v6 = vld [vmem:[#allocation2 + $0x214] sm:$0xf0] }
 0x168   :  { %v1411_v7 = vadd.f32 %v1410_v5, %v1362_v43  ;;  %v1268_v32 = vpop.f32.mrf.mxu0  ;;  %v1317_v19 = vpop.f32.mrf.mxu1  ;;  %v2827_v43 = vld [vmem:[#allocation2 + $0x128] sm:$0xf]  ;;  %v3360_v5 = vld [vmem:[#allocation2 + $0x134] sm:$0xf0]  ;;  %v2940_v48 = vor.u32 %v3388_v6, %v2939_v41 }
 0x169   :  { %v1269_v12 = vadd.f32 %v1268_v32, %v3930_v45  ;;  %1782 = vmatpush.bf16.msrb.mxu3 %v3084_v50  ;;  %v2828_v32 = vor.u32 %v3360_v5, %v2827_v43  ;;  %v3324_v50 = vld [vmem:[#allocation2 + $0x14] sm:$0xf0]  ;;  %v2811_v5 = vld [vmem:[#allocation2 + $0x108] sm:$0xf] }
 0x16a   :  { %v2049_v25 = vmax.f32 %v1411_v7, 0.0  ;;  %1559 = vmatmul.bf16.gmra.mxu2 %v3858_v16  ;;  %1608 = vmatmul.bf16.gmra.mxu3 %v3860_v17 }
 0x16b   :  { %v1318_v30 = vadd.f32 %v1317_v19, %v1269_v12  ;;  %1684 = vmatpush.bf16.msrb.mxu1 %v2828_v32  ;;  %1734 = vmatpush.bf16.msrb.mxu2 %v2940_v48  ;;  %v3356_v32 = vld [vmem:[#allocation2 + $0x114] sm:$0xf0] }
 0x16c   :  { %v3968_v42 = vpack.c.bf16 %v2049_v25, %v2045_v20 }
 0x16d   :  { %v1364_v40 = vpop.f32.mrf.mxu2  ;;  %v1413_v44 = vpop.f32.mrf.mxu3 }
 0x16e   :  { %v1365_v51 = vadd.f32 %v1364_v40, %v1316_v59  ;;  %v2683_v40 = vld [vmem:[#allocation2 + $0x8] sm:$0xf] }
 0x170   :  { %v1414_v57 = vadd.f32 %v1413_v44, %v1365_v51  ;;  %v1271_v46 = vpop.f32.mrf.mxu0  ;;  %v1320_v2 = vpop.f32.mrf.mxu1  ;;  %v3067_v51 = vld [vmem:[#allocation2 + $0x308] sm:$0xf] }
 0x171   :  { %v1272_v62 = vadd.f32 %v1271_v46, %v3930_v45 }
 0x172   :  { %v2053_v8 = vmax.f32 %v1414_v57, 0.0 }
 0x173   :  { %v1321_v7 = vadd.f32 %v1320_v2, %v1272_v62  ;;  %1466 = vmatmul.bf16.gmra.mxu0 %v3868_v49  ;;  %1515 = vmatmul.bf16.gmra.mxu1 %v3871_v52  ;;  %v2684_v62 = vor.u32 %v3324_v50, %v2683_v40 }
 0x175   :  { %v1366_v12 = vpop.f32.mrf.mxu2  ;;  %v1415_v19 = vpop.f32.mrf.mxu3  ;;  %1636 = vmatpush.bf16.msrb.mxu0 %v2684_v62  ;;  %v3350_v62 = vld [vmem:[#allocation2 + $0xec] sm:$0xf] }
 0x176   :  { %v1367_v59 = vadd.f32 %v1366_v12, %v1318_v30  ;;  %v3420_v30 = vld [vmem:[#allocation2 + $0x314] sm:$0xf0] }
 0x177   :  { %v3068_v2 = vor.u32 %v3420_v30, %v3067_v51  ;;  %v3414_v30 = vld [vmem:[#allocation2 + $0x2ec] sm:$0xf] }
 0x178   :  { %v1416_v20 = vadd.f32 %v1415_v19, %v1367_v59  ;;  %v1273_v25 = vpop.f32.mrf.mxu0  ;;  %v1322_v31 = vpop.f32.mrf.mxu1  ;;  %v2812_v19 = vor.u32 %v3356_v32, %v2811_v5 }
 0x179   :  { %v1274_v47 = vadd.f32 %v1273_v25, %v3930_v45  ;;  %1783 = vmatpush.bf16.msrb.mxu3 %v3068_v2 }
 0x17a   :  { %v2057_v39 = vmax.f32 %v1416_v20, 0.0  ;;  %1564 = vmatmul.bf16.gmra.mxu2 %v3878_v13  ;;  %1613 = vmatmul.bf16.gmra.mxu3 %v3880_v14 }
 0x17b   :  { %v1323_v35 = vadd.f32 %v1322_v31, %v1274_v47  ;;  %1685 = vmatpush.bf16.msrb.mxu1 %v2812_v19 }
 0x17c   :  { %v3976_v44 = vpack.c.bf16 %v2057_v39, %v2053_v8 }
 0x17d   :  { %v1369_v46 = vpop.f32.mrf.mxu2  ;;  %v1418_v57 = vpop.f32.mrf.mxu3 }
 0x17e   :  { %4210 = vst [vmem:[#allocation11_spill] sm:$0xff] %v3976_v44  ;;  %v1370_v43 = vadd.f32 %v1369_v46, %v1321_v7  ;;  %v3053_v46 = vld [vmem:[#allocation2 + $0x2f8] sm:$0xf0] }
 0x17f   :  { %v3056_v2 = vor.u32 %v3414_v30, %v3053_v46 }
 0x180   :  { %v1419_v12 = vadd.f32 %v1418_v57, %v1370_v43  ;;  %v1276_v59 = vpop.f32.mrf.mxu0  ;;  %v1325_v25 = vpop.f32.mrf.mxu1  ;;  %v2797_v43 = vld [vmem:[#allocation2 + $0xf8] sm:$0xf0]  ;;  %v3446_v57 = vld [vmem:[#allocation2 + $0x3ec] sm:$0xf] }
 0x181   :  { %v1277_v20 = vadd.f32 %v1276_v59, %v3930_v45  ;;  %v2800_v59 = vor.u32 %v3350_v62, %v2797_v43  ;;  %1923 = vmatpush.bf16.msra.mxu2 %v3056_v2 }
 0x182   :  { %v2061_v48 = vmax.f32 %v1419_v12, 0.0 }
 0x183   :  { %v1326_v47 = vadd.f32 %v1325_v25, %v1277_v20  ;;  %1471 = vmatmul.bf16.gmra.mxu0 %v3888_v61  ;;  %1520 = vmatmul.bf16.gmra.mxu1 %v3891_v63 }
 0x184   :  { %1825 = vmatpush.bf16.msra.mxu0 %v2800_v59  ;;  %v3410_v59 = vld [vmem:[#allocation2 + $0x2cc] sm:$0xf] }
 0x185   :  { %v1371_v31 = vpop.f32.mrf.mxu2  ;;  %v1420_v8 = vpop.f32.mrf.mxu3 }
 0x186   :  { %v1372_v7 = vadd.f32 %v1371_v31, %v1323_v35  ;;  %v3181_v35 = vld [vmem:[#allocation2 + $0x3f8] sm:$0xf0] }
 0x187   :  { %v3184_v19 = vor.u32 %v3446_v57, %v3181_v35 }
 0x188   :  { %v1421_v39 = vadd.f32 %v1420_v8, %v1372_v7  ;;  %v1278_v41 = vpop.f32.mrf.mxu0  ;;  %v1327_v40 = vpop.f32.mrf.mxu1 }
 0x189   :  { %v1279_v6 = vadd.f32 %v1278_v41, %v3930_v45  ;;  %1972 = vmatpush.bf16.msra.mxu3 %v3184_v19  ;;  %v2925_v41 = vld [vmem:[#allocation2 + $0x1f8] sm:$0xf0] }
 0x18a   :  { %v2065_v50 = vmax.f32 %v1421_v39, 0.0  ;;  %1569 = vmatmul.bf16.gmra.mxu2 %v3898_v21  ;;  %1618 = vmatmul.bf16.gmra.mxu3 %v3900_v22  ;;  %v3382_v39 = vld [vmem:[#allocation2 + $0x1ec] sm:$0xf]  ;;  %v3037_v19 = vld [vmem:[#allocation2 + $0x2d8] sm:$0xf0] }
 0x18b   :  { %v1328_v51 = vadd.f32 %v1327_v40, %v1279_v6  ;;  %v2928_v40 = vor.u32 %v3382_v39, %v2925_v41 }
 0x18c   :  { %v3984_v5 = vpack.c.bf16 %v2065_v50, %v2061_v48 }
 0x18d   :  { %v1374_v32 = vpop.f32.mrf.mxu2  ;;  %v1423_v12 = vpop.f32.mrf.mxu3  ;;  %1874 = vmatpush.bf16.msra.mxu1 %v2928_v40 }
 0x18e   :  { %4211 = vst [vmem:[#allocation12_spill] sm:$0xff] %v3984_v5  ;;  %v1375_v20 = vadd.f32 %v1374_v32, %v1326_v47  ;;  %v3993_v32 = vperm.slane %v3923_v28, 1 }
 0x190   :  { %v1424_v25 = vadd.f32 %v1423_v12, %v1375_v20  ;;  %v1281_v31 = vpop.f32.mrf.mxu0  ;;  %v1330_v8 = vpop.f32.mrf.mxu1  ;;  %v3346_v20 = vld [vmem:[#allocation2 + $0xcc] sm:$0xf] }
 0x191   :  { %v1282_v7 = vadd.f32 %v1281_v31, %v3930_v45  ;;  %v3040_v31 = vor.u32 %v3410_v59, %v3037_v19 }
 0x192   :  { %v2069_v43 = vmax.f32 %v1424_v25, 0.0 }
 0x193   :  { %v1331_v6 = vadd.f32 %v1330_v8, %v1282_v7  ;;  %1476 = vmatmul.bf16.gmra.mxu0 %v3908_v0  ;;  %1525 = vmatmul.bf16.gmra.mxu1 %v3911_v3  ;;  %v2781_v7 = vld [vmem:[#allocation2 + $0xd8] sm:$0xf0] }
 0x194   :  { %v3165_v8 = vld [vmem:[#allocation2 + $0x3d8] sm:$0xf0]  ;;  %v2784_v41 = vor.u32 %v3346_v20, %v2781_v7  ;;  %1924 = vmatpush.bf16.msra.mxu2 %v3040_v31 }
 0x195   :  { %v1376_v48 = vpop.f32.mrf.mxu2  ;;  %v1425_v50 = vpop.f32.mrf.mxu3 }
 0x196   :  { %v1377_v47 = vadd.f32 %v1376_v48, %v1328_v51  ;;  %1826 = vmatpush.bf16.msra.mxu0 %v2784_v41 }
 0x198   :  { %v1426_v30 = vadd.f32 %v1425_v50, %v1377_v47  ;;  %v1283_v46 = vpop.f32.mrf.mxu0  ;;  %v1332_v2 = vpop.f32.mrf.mxu1 }
 0x199   :  { %v1284_v62 = vadd.f32 %v1283_v46, %v3930_v45  ;;  %v3442_v45 = vld [vmem:[#allocation2 + $0x3cc] sm:$0xf]  ;;  %v2909_v46 = vld [vmem:[#allocation2 + $0x1d8] sm:$0xf0] }
 0x19a   :  { %v2073_v57 = vmax.f32 %v1426_v30, 0.0  ;;  %1574 = vmatmul.bf16.gmra.mxu2 %v3918_v27  ;;  %1623 = vmatmul.bf16.gmra.mxu3 %v3925_v29  ;;  %v3168_v40 = vor.u32 %v3442_v45, %v3165_v8  ;;  %v3378_v30 = vld [vmem:[#allocation2 + $0x1cc] sm:$0xf] }
 0x19b   :  { %v1333_v35 = vadd.f32 %v1332_v2, %v1284_v62  ;;  %v2912_v2 = vor.u32 %v3378_v30, %v2909_v46  ;;  %v3406_v8 = vld [vmem:[#allocation2 + $0x2ac] sm:$0xf] }
 0x19c   :  { %v3995_v51 = vpack.c.bf16 %v2073_v57, %v2069_v43  ;;  %1973 = vmatpush.bf16.msra.mxu3 %v3168_v40  ;;  %v2765_v40 = vld [vmem:[#allocation2 + $0xb8] sm:$0xf0] }
 0x19d   :  { %v1379_v12 = vpop.f32.mrf.mxu2  ;;  %v1428_v39 = vpop.f32.mrf.mxu3  ;;  %1875 = vmatpush.bf16.msra.mxu1 %v2912_v2 }
 0x19e   :  { %4212 = vst [vmem:[#allocation13_spill] sm:$0xff] %v3995_v51  ;;  %v1380_v25 = vadd.f32 %v1379_v12, %v1331_v6  ;;  %v3358_v51 = vld [vmem:[#allocation2 + $0x12c] sm:$0xf] }
 0x1a0   :  { %v1429_v48 = vadd.f32 %v1428_v39, %v1380_v25  ;;  %v1442_v47 = vpop.f32.mrf.mxu0  ;;  %v1491_v50 = vpop.f32.mrf.mxu1  ;;  %v3021_v25 = vld [vmem:[#allocation2 + $0x2b8] sm:$0xf0]  ;;  %v3342_v39 = vld [vmem:[#allocation2 + $0xac] sm:$0xf] }
 0x1a1   :  { %v1443_v28 = vadd.f32 %v1442_v47, %v3993_v32  ;;  %v3024_v41 = vor.u32 %v3406_v8, %v3021_v25  ;;  %v3438_v47 = vld [vmem:[#allocation2 + $0x3ac] sm:$0xf]  ;;  %v2768_v30 = vor.u32 %v3342_v39, %v2765_v40 }
 0x1a2   :  { %v2077_v31 = vmax.f32 %v1429_v48, 0.0 }
 0x1a3   :  { %v1492_v62 = vadd.f32 %v1491_v50, %v1443_v28  ;;  %1637 = vmatmul.bf16.vlgmr.msrb.gmra.mxu0 %v3768_v55  ;;  %1686 = vmatmul.bf16.vlgmr.msrb.gmra.mxu1 %v3771_v58 }
 0x1a4   :  { %1925 = vmatpush.bf16.msra.mxu2 %v3024_v41  ;;  %1827 = vmatpush.bf16.msra.mxu0 %v2768_v30  ;;  %v3402_v30 = vld [vmem:[#allocation2 + $0x28c] sm:$0xf] }
 0x1a5   :  { %v1381_v6 = vpop.f32.mrf.mxu2  ;;  %v1430_v57 = vpop.f32.mrf.mxu3 }
 0x1a6   :  { %v1382_v43 = vadd.f32 %v1381_v6, %v1333_v35  ;;  %v3149_v35 = vld [vmem:[#allocation2 + $0x3b8] sm:$0xf0] }
 0x1a7   :  { %v3152_v46 = vor.u32 %v3438_v47, %v3149_v35 }
 0x1a8   :  { %v1431_v59 = vadd.f32 %v1430_v57, %v1382_v43  ;;  %v1444_v19 = vpop.f32.mrf.mxu0  ;;  %v1493_v12 = vpop.f32.mrf.mxu1 }
 0x1a9   :  { %v1445_v20 = vadd.f32 %v1444_v19, %v3993_v32  ;;  %1974 = vmatpush.bf16.msra.mxu3 %v3152_v46  ;;  %v3374_v19 = vld [vmem:[#allocation2 + $0x1ac] sm:$0xf]  ;;  %v3005_v46 = vld [vmem:[#allocation2 + $0x298] sm:$0xf0] }
 0x1aa   :  { %v2081_v7 = vmax.f32 %v1431_v59, 0.0  ;;  %1735 = vmatmul.bf16.vlgmr.msrb.gmra.mxu2 %v3778_v9  ;;  %1784 = vmatmul.bf16.vlgmr.msrb.gmra.mxu3 %v3780_v10 }
 0x1ab   :  { %v1494_v45 = vadd.f32 %v1493_v12, %v1445_v20  ;;  %v2893_v20 = vld [vmem:[#allocation2 + $0x1b8] sm:$0xf0] }
 0x1ac   :  { %v4003_v28 = vpack.c.bf16 %v2081_v7, %v2077_v31  ;;  %v2896_v31 = vor.u32 %v3374_v19, %v2893_v20 }
 0x1ad   :  { %v1540_v50 = vpop.f32.mrf.mxu2  ;;  %v1589_v48 = vpop.f32.mrf.mxu3 }
 0x1ae   :  { %4213 = vst [vmem:[#allocation14_spill] sm:$0xff] %v4003_v28  ;;  %v1541_v2 = vadd.f32 %v1540_v50, %v1492_v62  ;;  %1876 = vmatpush.bf16.msra.mxu1 %v2896_v31  ;;  %v3362_v28 = vld [vmem:[#allocation2 + $0x14c] sm:$0xf] }
 0x1b0   :  { %v1590_v6 = vadd.f32 %v1589_v48, %v1541_v2  ;;  %v1447_v43 = vpop.f32.mrf.mxu0  ;;  %v1496_v59 = vpop.f32.mrf.mxu1  ;;  %v3338_v2 = vld [vmem:[#allocation2 + $0x8c] sm:$0xf] }
 0x1b1   :  { %v1448_v57 = vadd.f32 %v1447_v43, %v3993_v32  ;;  %v3008_v43 = vor.u32 %v3402_v30, %v3005_v46 }
 0x1b2   :  { %v2022_v47 = vmax.f32 %v1590_v6, 0.0 }
 0x1b3   :  { %v1497_v12 = vadd.f32 %v1496_v59, %v1448_v57  ;;  %1642 = vmatmul.bf16.gmra.mxu0 %v3788_v33  ;;  %1691 = vmatmul.bf16.gmra.mxu1 %v3791_v36  ;;  %v3434_v57 = vld [vmem:[#allocation2 + $0x38c] sm:$0xf]  ;;  %v3133_v59 = vld [vmem:[#allocation2 + $0x398] sm:$0xf0] }
 0x1b4   :  { %v3136_v31 = vor.u32 %v3434_v57, %v3133_v59  ;;  %1926 = vmatpush.bf16.msra.mxu2 %v3008_v43 }
 0x1b5   :  { %v1542_v7 = vpop.f32.mrf.mxu2  ;;  %v1591_v8 = vpop.f32.mrf.mxu3 }
 0x1b6   :  { %v1543_v62 = vadd.f32 %v1542_v7, %v1494_v45  ;;  %v2749_v45 = vld [vmem:[#allocation2 + $0x98] sm:$0xf0]  ;;  %1975 = vmatpush.bf16.msra.mxu3 %v3136_v31  ;;  %v3398_v31 = vld [vmem:[#allocation2 + $0x26c] sm:$0xf] }
 0x1b7   :  { %v2752_v20 = vor.u32 %v3338_v2, %v2749_v45 }
 0x1b8   :  { %v1592_v25 = vadd.f32 %v1591_v8, %v1543_v62  ;;  %v1449_v39 = vpop.f32.mrf.mxu0  ;;  %v1498_v40 = vpop.f32.mrf.mxu1 }
 0x1b9   :  { %v1450_v41 = vadd.f32 %v1449_v39, %v3993_v32  ;;  %1828 = vmatpush.bf16.msra.mxu0 %v2752_v20 }
 0x1ba   :  { %v2026_v35 = vmax.f32 %v1592_v25, 0.0  ;;  %1740 = vmatmul.bf16.gmra.mxu2 %v3798_v53  ;;  %1789 = vmatmul.bf16.gmra.mxu3 %v3800_v54 }
 0x1bb   :  { %v1499_v50 = vadd.f32 %v1498_v40, %v1450_v41  ;;  %v3370_v41 = vld [vmem:[#allocation2 + $0x18c] sm:$0xf]  ;;  %v2877_v40 = vld [vmem:[#allocation2 + $0x198] sm:$0xf0] }
 0x1bc   :  { %v4011_v48 = vpack.c.bf16 %v2026_v35, %v2022_v47  ;;  %v2880_v35 = vor.u32 %v3370_v41, %v2877_v40 }
 0x1bd   :  { %v1545_v19 = vpop.f32.mrf.mxu2  ;;  %v1594_v6 = vpop.f32.mrf.mxu3 }
 0x1be   :  { %v1546_v7 = vadd.f32 %v1545_v19, %v1497_v12  ;;  %1877 = vmatpush.bf16.msra.mxu1 %v2880_v35 }
 0x1c0   :  { %v1595_v62 = vadd.f32 %v1594_v6, %v1546_v7  ;;  %v1452_v8 = vpop.f32.mrf.mxu0  ;;  %v1501_v39 = vpop.f32.mrf.mxu1  ;;  %v2989_v7 = vld [vmem:[#allocation2 + $0x278] sm:$0xf0]  ;;  %v3334_v6 = vld [vmem:[#allocation2 + $0x6c] sm:$0xf] }
 0x1c1   :  { %v1453_v25 = vadd.f32 %v1452_v8, %v3993_v32  ;;  %v2992_v8 = vor.u32 %v3398_v31, %v2989_v7  ;;  %v2861_v31 = vld [vmem:[#allocation2 + $0x178] sm:$0xf0] }
 0x1c2   :  { %v2030_v59 = vmax.f32 %v1595_v62, 0.0 }
 0x1c3   :  { %v1502_v47 = vadd.f32 %v1501_v39, %v1453_v25  ;;  %1647 = vmatmul.bf16.gmra.mxu0 %v3808_v15  ;;  %1696 = vmatmul.bf16.gmra.mxu1 %v3811_v18  ;;  %v2733_v25 = vld [vmem:[#allocation2 + $0x78] sm:$0xf0]  ;;  %v3430_v39 = vld [vmem:[#allocation2 + $0x36c] sm:$0xf] }
 0x1c4   :  { %v2736_v35 = vor.u32 %v3334_v6, %v2733_v25  ;;  %1927 = vmatpush.bf16.msra.mxu2 %v2992_v8 }
 0x1c5   :  { %v1547_v30 = vpop.f32.mrf.mxu2  ;;  %v1596_v46 = vpop.f32.mrf.mxu3 }
 0x1c6   :  { %v1548_v12 = vadd.f32 %v1547_v30, %v1499_v50  ;;  %v3117_v50 = vld [vmem:[#allocation2 + $0x378] sm:$0xf0]  ;;  %1829 = vmatpush.bf16.msra.mxu0 %v2736_v35 }
 0x1c7   :  { %v3120_v30 = vor.u32 %v3430_v39, %v3117_v50 }
 0x1c8   :  { %v1597_v2 = vadd.f32 %v1596_v46, %v1548_v12  ;;  %v1454_v43 = vpop.f32.mrf.mxu0  ;;  %v1503_v57 = vpop.f32.mrf.mxu1 }
 0x1c9   :  { %v1455_v45 = vadd.f32 %v1454_v43, %v3993_v32  ;;  %1976 = vmatpush.bf16.msra.mxu3 %v3120_v30 }
 0x1ca   :  { %v2034_v19 = vmax.f32 %v1597_v2, 0.0  ;;  %1745 = vmatmul.bf16.gmra.mxu2 %v3818_v37  ;;  %1794 = vmatmul.bf16.gmra.mxu3 %v3820_v38 }
 0x1cb   :  { %v1504_v20 = vadd.f32 %v1503_v57, %v1455_v45  ;;  %v3366_v57 = vld [vmem:[#allocation2 + $0x16c] sm:$0xf] }
 0x1cc   :  { %v4019_v41 = vpack.c.bf16 %v2034_v19, %v2030_v59  ;;  %v2864_v59 = vor.u32 %v3366_v57, %v2861_v31  ;;  %v3426_v57 = vld [vmem:[#allocation2 + $0x34c] sm:$0xf] }
 0x1cd   :  { %v1550_v40 = vpop.f32.mrf.mxu2  ;;  %v1599_v62 = vpop.f32.mrf.mxu3 }
 0x1ce   :  { %v1551_v12 = vadd.f32 %v1550_v40, %v1502_v47  ;;  %1878 = vmatpush.bf16.msra.mxu1 %v2864_v59 }
 0x1d0   :  { %v1600_v46 = vadd.f32 %v1599_v62, %v1551_v12  ;;  %v1457_v2 = vpop.f32.mrf.mxu0  ;;  %v1506_v45 = vpop.f32.mrf.mxu1  ;;  %v3394_v12 = vld [vmem:[#allocation2 + $0x24c] sm:$0xf]  ;;  %v2973_v62 = vld [vmem:[#allocation2 + $0x258] sm:$0xf0] }
 0x1d1   :  { %v1458_v43 = vadd.f32 %v1457_v2, %v3993_v32  ;;  %v3330_v2 = vld [vmem:[#allocation2 + $0x4c] sm:$0xf] }
 0x1d2   :  { %v2038_v40 = vmax.f32 %v1600_v46, 0.0 }
 0x1d3   :  { %v1507_v7 = vadd.f32 %v1506_v45, %v1458_v43  ;;  %1652 = vmatmul.bf16.gmra.mxu0 %v3828_v1  ;;  %1701 = vmatmul.bf16.gmra.mxu1 %v3831_v4  ;;  %v2976_v43 = vor.u32 %v3394_v12, %v2973_v62  ;;  %v2717_v45 = vld [vmem:[#allocation2 + $0x58] sm:$0xf0] }
 0x1d4   :  { %v2845_v12 = vld [vmem:[#allocation2 + $0x158] sm:$0xf0] }
 0x1d5   :  { %v1552_v19 = vpop.f32.mrf.mxu2  ;;  %v1601_v6 = vpop.f32.mrf.mxu3  ;;  %1928 = vmatpush.bf16.msra.mxu2 %v2976_v43 }
 0x1d6   :  { %v1553_v47 = vadd.f32 %v1552_v19, %v1504_v20  ;;  %v3101_v20 = vld [vmem:[#allocation2 + $0x358] sm:$0xf0]  ;;  %v2720_v19 = vor.u32 %v3330_v2, %v2717_v45 }
 0x1d8   :  { %v1602_v8 = vadd.f32 %v1601_v6, %v1553_v47  ;;  %v1459_v25 = vpop.f32.mrf.mxu0  ;;  %v1508_v50 = vpop.f32.mrf.mxu1  ;;  %v3104_v47 = vor.u32 %v3426_v57, %v3101_v20  ;;  %1830 = vmatpush.bf16.msra.mxu0 %v2720_v19 }
 0x1d9   :  { %v1460_v39 = vadd.f32 %v1459_v25, %v3993_v32 }
 0x1da   :  { %v2042_v35 = vmax.f32 %v1602_v8, 0.0  ;;  %1750 = vmatmul.bf16.gmra.mxu2 %v3838_v23  ;;  %1799 = vmatmul.bf16.gmra.mxu3 %v3840_v24 }
 0x1db   :  { %v1509_v30 = vadd.f32 %v1508_v50, %v1460_v39  ;;  %1977 = vmatpush.bf16.msra.mxu3 %v3104_v47 }
 0x1dc   :  { %v4027_v31 = vpack.c.bf16 %v2042_v35, %v2038_v40  ;;  %v2848_v40 = vor.u32 %v3362_v28, %v2845_v12  ;;  %v2957_v28 = vld [vmem:[#allocation2 + $0x238] sm:$0xf0] }
 0x1dd   :  { %v1555_v59 = vpop.f32.mrf.mxu2  ;;  %v1604_v46 = vpop.f32.mrf.mxu3 }
 0x1de   :  { %v1556_v6 = vadd.f32 %v1555_v59, %v1507_v7  ;;  %1879 = vmatpush.bf16.msra.mxu1 %v2848_v40 }
 0x1e0   :  { %v1605_v8 = vadd.f32 %v1604_v46, %v1556_v6  ;;  %v1462_v25 = vpop.f32.mrf.mxu0  ;;  %v1511_v50 = vpop.f32.mrf.mxu1  ;;  %v3390_v6 = vld [vmem:[#allocation2 + $0x22c] sm:$0xf] }
 0x1e1   :  { %v1463_v39 = vadd.f32 %v1462_v25, %v3993_v32  ;;  %v3326_v46 = vld [vmem:[#allocation2 + $0x2c] sm:$0xf]  ;;  %v2960_v25 = vor.u32 %v3390_v6, %v2957_v28  ;;  %v2829_v6 = vld [vmem:[#allocation2 + $0x138] sm:$0xf0] }
 0x1e2   :  { %v2046_v59 = vmax.f32 %v1605_v8, 0.0 }
 0x1e3   :  { %v1512_v62 = vadd.f32 %v1511_v50, %v1463_v39  ;;  %1657 = vmatmul.bf16.gmra.mxu0 %v3848_v56  ;;  %1706 = vmatmul.bf16.gmra.mxu1 %v3851_v60  ;;  %v2701_v39 = vld [vmem:[#allocation2 + $0x38] sm:$0xf0]  ;;  %v3422_v50 = vld [vmem:[#allocation2 + $0x32c] sm:$0xf] }
 0x1e4   :  { %1929 = vmatpush.bf16.msra.mxu2 %v2960_v25 }
 0x1e5   :  { %v1557_v35 = vpop.f32.mrf.mxu2  ;;  %v1606_v2 = vpop.f32.mrf.mxu3 }
 0x1e6   :  { %v1558_v7 = vadd.f32 %v1557_v35, %v1509_v30  ;;  %v3085_v30 = vld [vmem:[#allocation2 + $0x338] sm:$0xf0]  ;;  %v2704_v35 = vor.u32 %v3326_v46, %v2701_v39 }
 0x1e8   :  { %v1607_v43 = vadd.f32 %v1606_v2, %v1558_v7  ;;  %v1464_v45 = vpop.f32.mrf.mxu0  ;;  %v1513_v20 = vpop.f32.mrf.mxu1  ;;  %v3088_v7 = vor.u32 %v3422_v50, %v3085_v30  ;;  %1831 = vmatpush.bf16.msra.mxu0 %v2704_v35 }
 0x1e9   :  { %v1465_v57 = vadd.f32 %v1464_v45, %v3993_v32 }
 0x1ea   :  { %v2050_v19 = vmax.f32 %v1607_v43, 0.0  ;;  %1755 = vmatmul.bf16.gmra.mxu2 %v3858_v16  ;;  %1804 = vmatmul.bf16.gmra.mxu3 %v3860_v17 }
 0x1eb   :  { %v1514_v47 = vadd.f32 %v1513_v20, %v1465_v57  ;;  %1978 = vmatpush.bf16.msra.mxu3 %v3088_v7 }
 0x1ec   :  { %v4035_v12 = vpack.c.bf16 %v2050_v19, %v2046_v59  ;;  %v2832_v59 = vor.u32 %v3358_v51, %v2829_v6  ;;  %v2941_v51 = vld [vmem:[#allocation2 + $0x218] sm:$0xf0] }
 0x1ed   :  { %v1560_v40 = vpop.f32.mrf.mxu2  ;;  %v1609_v8 = vpop.f32.mrf.mxu3 }
 0x1ee   :  { %v1561_v2 = vadd.f32 %v1560_v40, %v1512_v62  ;;  %1880 = vmatpush.bf16.msra.mxu1 %v2832_v59 }
 0x1f0   :  { %v1610_v43 = vadd.f32 %v1609_v8, %v1561_v2  ;;  %v1467_v45 = vpop.f32.mrf.mxu0  ;;  %v1516_v20 = vpop.f32.mrf.mxu1  ;;  %v3386_v2 = vld [vmem:[#allocation2 + $0x20c] sm:$0xf] }
 0x1f1   :  { %v1468_v57 = vadd.f32 %v1467_v45, %v3993_v32  ;;  %v3322_v8 = vld [vmem:[#allocation2 + $0xc] sm:$0xf]  ;;  %v2944_v45 = vor.u32 %v3386_v2, %v2941_v51 }
 0x1f2   :  { %v2054_v40 = vmax.f32 %v1610_v43, 0.0 }
 0x1f3   :  { %v1517_v28 = vadd.f32 %v1516_v20, %v1468_v57  ;;  %1662 = vmatmul.bf16.gmra.mxu0 %v3868_v49  ;;  %1711 = vmatmul.bf16.gmra.mxu1 %v3871_v52  ;;  %v2685_v57 = vld [vmem:[#allocation2 + $0x18] sm:$0xf0]  ;;  %v3418_v20 = vld [vmem:[#allocation2 + $0x30c] sm:$0xf] }
 0x1f4   :  { %1930 = vmatpush.bf16.msra.mxu2 %v2944_v45 }
 0x1f5   :  { %v1562_v19 = vpop.f32.mrf.mxu2  ;;  %v1611_v46 = vpop.f32.mrf.mxu3 }
 0x1f6   :  { %v1563_v62 = vadd.f32 %v1562_v19, %v1514_v47  ;;  %v3069_v47 = vld [vmem:[#allocation2 + $0x318] sm:$0xf0]  ;;  %v2688_v19 = vor.u32 %v3322_v8, %v2685_v57 }
 0x1f8   :  { %v1612_v25 = vadd.f32 %v1611_v46, %v1563_v62  ;;  %v1469_v39 = vpop.f32.mrf.mxu0  ;;  %v1518_v30 = vpop.f32.mrf.mxu1  ;;  %v3072_v62 = vor.u32 %v3418_v20, %v3069_v47  ;;  %1832 = vmatpush.bf16.msra.mxu0 %v2688_v19 }
 0x1f9   :  { %v1470_v50 = vadd.f32 %v1469_v39, %v3993_v32  ;;  %v2813_v39 = vld [vmem:[#allocation2 + $0x118] sm:$0xf0] }
 0x1fa   :  { %v2058_v35 = vmax.f32 %v1612_v25, 0.0  ;;  %1760 = vmatmul.bf16.gmra.mxu2 %v3878_v13  ;;  %1809 = vmatmul.bf16.gmra.mxu3 %v3880_v14  ;;  %v3354_v25 = vld [vmem:[#allocation2 + $0x10c] sm:$0xf] }
 0x1fb   :  { %v1519_v7 = vadd.f32 %v1518_v30, %v1470_v50  ;;  %1979 = vmatpush.bf16.msra.mxu3 %v3072_v62  ;;  %v2816_v5 = vor.u32 %v3354_v25, %v2813_v39 }
 0x1fc   :  { %v4043_v6 = vpack.c.bf16 %v2058_v35, %v2054_v40 }
 0x1fd   :  { %v1565_v59 = vpop.f32.mrf.mxu2  ;;  %v1614_v43 = vpop.f32.mrf.mxu3  ;;  %1881 = vmatpush.bf16.msra.mxu1 %v2816_v5 }
 0x1fe   :  { %v1566_v46 = vadd.f32 %v1565_v59, %v1517_v28 }
 0x200   :  { %v1615_v50 = vadd.f32 %v1614_v43, %v1566_v46  ;;  %v1472_v30 = vpop.f32.mrf.mxu0  ;;  %v1521_v51 = vpop.f32.mrf.mxu1 }
 0x201   :  { %v1473_v2 = vadd.f32 %v1472_v30, %v3993_v32 }
 0x202   :  { %v2062_v47 = vmax.f32 %v1615_v50, 0.0 }
 0x203   :  { %v1522_v44 = vadd.f32 %v1521_v51, %v1473_v2  ;;  %1667 = vmatmul.bf16.gmra.mxu0 %v3888_v61  ;;  %1716 = vmatmul.bf16.gmra.mxu1 %v3891_v63 }
 0x205   :  { %v1567_v40 = vpop.f32.mrf.mxu2  ;;  %v1616_v35 = vpop.f32.mrf.mxu3 }
 0x206   :  { %v1568_v28 = vadd.f32 %v1567_v40, %v1519_v7 }
 0x208   :  { %v1617_v8 = vadd.f32 %v1616_v35, %v1568_v28  ;;  %v1474_v45 = vpop.f32.mrf.mxu0  ;;  %v1523_v20 = vpop.f32.mrf.mxu1 }
 0x209   :  { %v1475_v57 = vadd.f32 %v1474_v45, %v3993_v32 }
 0x20a   :  { %v2066_v59 = vmax.f32 %v1617_v8, 0.0  ;;  %1765 = vmatmul.bf16.gmra.mxu2 %v3898_v21  ;;  %1814 = vmatmul.bf16.gmra.mxu3 %v3900_v22 }
 0x20b   :  { %v1524_v19 = vadd.f32 %v1523_v20, %v1475_v57 }
 0x20c   :  { %v4051_v5 = vpack.c.bf16 %v2066_v59, %v2062_v47  ;;  %v3472_v47 = vld [vmem:[#allocation5 + $0xb8] sm:$0xff] }
 0x20d   :  { %v1570_v62 = vpop.f32.mrf.mxu2  ;;  %v1619_v43 = vpop.f32.mrf.mxu3  ;;  %2475 = vmatpush.bf16.msrb.mxu2 %v3472_v47 }
 0x20e   :  { %v1571_v46 = vadd.f32 %v1570_v62, %v1522_v44 }
 0x210   :  { %v1620_v25 = vadd.f32 %v1619_v43, %v1571_v46  ;;  %v1477_v7 = vpop.f32.mrf.mxu0  ;;  %v1526_v30 = vpop.f32.mrf.mxu1 }
 0x211   :  { %v1478_v39 = vadd.f32 %v1477_v7, %v3993_v32 }
 0x212   :  { %v2070_v44 = vmax.f32 %v1620_v25, 0.0 }
 0x213   :  { %v1527_v2 = vadd.f32 %v1526_v30, %v1478_v39  ;;  %1672 = vmatmul.bf16.gmra.mxu0 %v3908_v0  ;;  %1721 = vmatmul.bf16.gmra.mxu1 %v3911_v3 }
 0x215   :  { %v1572_v50 = vpop.f32.mrf.mxu2  ;;  %v1621_v40 = vpop.f32.mrf.mxu3 }
 0x216   :  { %v1573_v51 = vadd.f32 %v1572_v50, %v1524_v19  ;;  %v4064_v19 = vld [vmem:[%s4206_s4] sm:$0xf]  ;;  %v3456_v50 = vld [vmem:[#allocation5 + $0x38] sm:$0xff] }
 0x217   :  { %v4067_v46 = vperm.slane %v4064_v19, 2  ;;  %2377 = vmatpush.bf16.msrb.mxu0 %v3456_v50 }
 0x218   :  { %v1622_v28 = vadd.f32 %v1621_v40, %v1573_v51  ;;  %v1479_v35 = vpop.f32.mrf.mxu0  ;;  %v1528_v45 = vpop.f32.mrf.mxu1  ;;  %v3480_v51 = vld [vmem:[#allocation5 + $0xf8] sm:$0xff] }
 0x219   :  { %v1480_v8 = vadd.f32 %v1479_v35, %v3993_v32  ;;  %v3464_v40 = vld [vmem:[#allocation5 + $0x78] sm:$0xff]  ;;  %2524 = vmatpush.bf16.msrb.mxu3 %v3480_v51 }
 0x21a   :  { %v2074_v57 = vmax.f32 %v1622_v28, 0.0  ;;  %1770 = vmatmul.bf16.gmra.mxu2 %v3918_v27  ;;  %1819 = vmatmul.bf16.gmra.mxu3 %v3925_v29 }
 0x21b   :  { %v1529_v20 = vadd.f32 %v1528_v45, %v1480_v8  ;;  %2426 = vmatpush.bf16.msrb.mxu1 %v3464_v40 }
 0x21c   :  { %v4059_v59 = vpack.c.bf16 %v2074_v57, %v2070_v44 }
 0x21d   :  { %v1575_v62 = vpop.f32.mrf.mxu2  ;;  %v1624_v43 = vpop.f32.mrf.mxu3 }
 0x21e   :  { %v1576_v32 = vadd.f32 %v1575_v62, %v1527_v2 }
 0x220   :  { %v1625_v25 = vadd.f32 %v1624_v43, %v1576_v32  ;;  %v1638_v7 = vpop.f32.mrf.mxu0  ;;  %v1687_v30 = vpop.f32.mrf.mxu1 }
 0x221   :  { %v1639_v39 = vadd.f32 %v1638_v7, %v4067_v46 }
 0x222   :  { %v2078_v62 = vmax.f32 %v1625_v25, 0.0  ;;  %v3479_v25 = vld [vmem:[#allocation5 + $0xf0] sm:$0xff] }
 0x223   :  { %v1688_v28 = vadd.f32 %v1687_v30, %v1639_v39  ;;  %1833 = vmatmul.bf16.vlgmr.msra.gmra.mxu0 %v3768_v55  ;;  %1882 = vmatmul.bf16.vlgmr.msra.gmra.mxu1 %v3771_v58  ;;  %v3471_v55 = vld [vmem:[#allocation5 + $0xb0] sm:$0xff] }
 0x224   :  { %2476 = vmatpush.bf16.msrb.mxu2 %v3471_v55  ;;  %2525 = vmatpush.bf16.msrb.mxu3 %v3479_v25  ;;  %v3462_v25 = vld [vmem:[#allocation5 + $0x68] sm:$0xff] }
 0x225   :  { %v1577_v35 = vpop.f32.mrf.mxu2  ;;  %v1626_v8 = vpop.f32.mrf.mxu3 }
 0x226   :  { %v1578_v2 = vadd.f32 %v1577_v35, %v1529_v20  ;;  %v3455_v35 = vld [vmem:[#allocation5 + $0x30] sm:$0xff] }
 0x227   :  { %2378 = vmatpush.bf16.msrb.mxu0 %v3455_v35  ;;  %v3454_v35 = vld [vmem:[#allocation5 + $0x28] sm:$0xff] }
 0x228   :  { %v1627_v45 = vadd.f32 %v1626_v8, %v1578_v2  ;;  %v1640_v44 = vpop.f32.mrf.mxu0  ;;  %v1689_v47 = vpop.f32.mrf.mxu1  ;;  %v3463_v2 = vld [vmem:[#allocation5 + $0x70] sm:$0xff] }
 0x229   :  { %v1641_v57 = vadd.f32 %v1640_v44, %v4067_v46  ;;  %2427 = vmatpush.bf16.msrb.mxu1 %v3463_v2 }
 0x22a   :  { %v2082_v32 = vmax.f32 %v1627_v45, 0.0  ;;  %1931 = vmatmul.bf16.vlgmr.msra.gmra.mxu2 %v3778_v9  ;;  %1980 = vmatmul.bf16.vlgmr.msra.gmra.mxu3 %v3780_v10 }
 0x22b   :  { %v1690_v43 = vadd.f32 %v1689_v47, %v1641_v57  ;;  %2379 = vmatpush.bf16.msrb.mxu0 %v3454_v35 }
 0x22c   :  { %v4075_v58 = vpack.c.bf16 %v2082_v32, %v2078_v62 }
 0x22d   :  { %v1736_v7 = vpop.f32.mrf.mxu2  ;;  %v1785_v20 = vpop.f32.mrf.mxu3  ;;  %2428 = vmatpush.bf16.msrb.mxu1 %v3462_v25 }
 0x22e   :  { %v1737_v39 = vadd.f32 %v1736_v7, %v1688_v28 }
 0x230   :  { %v1786_v30 = vadd.f32 %v1785_v20, %v1737_v39  ;;  %v1643_v50 = vpop.f32.mrf.mxu0  ;;  %v1692_v40 = vpop.f32.mrf.mxu1 }
 0x231   :  { %v1644_v51 = vadd.f32 %v1643_v50, %v4067_v46 }
 0x232   :  { %v2023_v62 = vmax.f32 %v1786_v30, 0.0  ;;  %v3478_v30 = vld [vmem:[#allocation5 + $0xe8] sm:$0xff] }
 0x233   :  { %v1693_v8 = vadd.f32 %v1692_v40, %v1644_v51  ;;  %1838 = vmatmul.bf16.gmra.mxu0 %v3788_v33  ;;  %1887 = vmatmul.bf16.gmra.mxu1 %v3791_v36  ;;  %v3470_v33 = vld [vmem:[#allocation5 + $0xa8] sm:$0xff] }
 0x234   :  { %2477 = vmatpush.bf16.msrb.mxu2 %v3470_v33  ;;  %2526 = vmatpush.bf16.msrb.mxu3 %v3478_v30 }
 0x235   :  { %v1738_v9 = vpop.f32.mrf.mxu2  ;;  %v1787_v28 = vpop.f32.mrf.mxu3 }
 0x236   :  { %v1739_v10 = vadd.f32 %v1738_v9, %v1690_v43 }
 0x238   :  { %v1788_v45 = vadd.f32 %v1787_v28, %v1739_v10  ;;  %v1645_v44 = vpop.f32.mrf.mxu0  ;;  %v1694_v47 = vpop.f32.mrf.mxu1 }
 0x239   :  { %v1646_v57 = vadd.f32 %v1645_v44, %v4067_v46 }
 0x23a   :  { %v2027_v32 = vmax.f32 %v1788_v45, 0.0  ;;  %1936 = vmatmul.bf16.gmra.mxu2 %v3798_v53  ;;  %1985 = vmatmul.bf16.gmra.mxu3 %v3800_v54 }
 0x23b   :  { %v1695_v55 = vadd.f32 %v1694_v47, %v1646_v57 }
 0x23c   :  { %v4083_v36 = vpack.c.bf16 %v2027_v32, %v2023_v62 }
 0x23d   :  { %v1741_v7 = vpop.f32.mrf.mxu2  ;;  %v1790_v43 = vpop.f32.mrf.mxu3 }
 0x23e   :  { %v1742_v39 = vadd.f32 %v1741_v7, %v1693_v8 }
 0x240   :  { %v1791_v20 = vadd.f32 %v1790_v43, %v1742_v39  ;;  %v1648_v50 = vpop.f32.mrf.mxu0  ;;  %v1697_v40 = vpop.f32.mrf.mxu1 }
 0x241   :  { %v1649_v51 = vadd.f32 %v1648_v50, %v4067_v46  ;;  %v3453_v50 = vld [vmem:[#allocation5 + $0x20] sm:$0xff] }
 0x242   :  { %v2031_v44 = vmax.f32 %v1791_v20, 0.0  ;;  %v3477_v20 = vld [vmem:[#allocation5 + $0xe0] sm:$0xff]  ;;  %2380 = vmatpush.bf16.msrb.mxu0 %v3453_v50 }
 0x243   :  { %v1698_v2 = vadd.f32 %v1697_v40, %v1649_v51  ;;  %1843 = vmatmul.bf16.gmra.mxu0 %v3808_v15  ;;  %1892 = vmatmul.bf16.gmra.mxu1 %v3811_v18  ;;  %v3469_v15 = vld [vmem:[#allocation5 + $0xa0] sm:$0xff] }
 0x244   :  { %2478 = vmatpush.bf16.msrb.mxu2 %v3469_v15  ;;  %v3461_v51 = vld [vmem:[#allocation5 + $0x60] sm:$0xff]  ;;  %2527 = vmatpush.bf16.msrb.mxu3 %v3477_v20 }
 0x245   :  { %v1743_v53 = vpop.f32.mrf.mxu2  ;;  %v1792_v8 = vpop.f32.mrf.mxu3  ;;  %2429 = vmatpush.bf16.msrb.mxu1 %v3461_v51 }
 0x246   :  { %v1744_v54 = vadd.f32 %v1743_v53, %v1695_v55 }
 0x248   :  { %v1793_v9 = vadd.f32 %v1792_v8, %v1744_v54  ;;  %v1650_v10 = vpop.f32.mrf.mxu0  ;;  %v1699_v45 = vpop.f32.mrf.mxu1 }
 0x249   :  { %v1651_v28 = vadd.f32 %v1650_v10, %v4067_v46 }
 0x24a   :  { %v2035_v57 = vmax.f32 %v1793_v9, 0.0  ;;  %1941 = vmatmul.bf16.gmra.mxu2 %v3818_v37  ;;  %1990 = vmatmul.bf16.gmra.mxu3 %v3820_v38 }
 0x24b   :  { %v1700_v47 = vadd.f32 %v1699_v45, %v1651_v28 }
 0x24c   :  { %v4091_v18 = vpack.c.bf16 %v2035_v57, %v2031_v44 }
 0x24d   :  { %v1746_v62 = vpop.f32.mrf.mxu2  ;;  %v1795_v55 = vpop.f32.mrf.mxu3 }
 0x24e   :  { %v1747_v32 = vadd.f32 %v1746_v62, %v1698_v2  ;;  %v3452_v62 = vld [vmem:[#allocation5 + $0x18] sm:$0xff] }
 0x24f   :  { %2381 = vmatpush.bf16.msrb.mxu0 %v3452_v62 }
 0x250   :  { %v1796_v33 = vadd.f32 %v1795_v55, %v1747_v32  ;;  %v1653_v7 = vpop.f32.mrf.mxu0  ;;  %v1702_v43 = vpop.f32.mrf.mxu1  ;;  %v3476_v32 = vld [vmem:[#allocation5 + $0xd8] sm:$0xff] }
 0x251   :  { %v1654_v39 = vadd.f32 %v1653_v7, %v4067_v46  ;;  %v3460_v55 = vld [vmem:[#allocation5 + $0x58] sm:$0xff]  ;;  %2528 = vmatpush.bf16.msrb.mxu3 %v3476_v32 }
 0x252   :  { %v2039_v54 = vmax.f32 %v1796_v33, 0.0  ;;  %2430 = vmatpush.bf16.msrb.mxu1 %v3460_v55  ;;  %v3458_v55 = vld [vmem:[#allocation5 + $0x48] sm:$0xff] }
 0x253   :  { %v1703_v40 = vadd.f32 %v1702_v43, %v1654_v39  ;;  %1848 = vmatmul.bf16.gmra.mxu0 %v3828_v1  ;;  %1897 = vmatmul.bf16.gmra.mxu1 %v3831_v4  ;;  %v3468_v1 = vld [vmem:[#allocation5 + $0x98] sm:$0xff] }
 0x254   :  { %2479 = vmatpush.bf16.msrb.mxu2 %v3468_v1  ;;  %v3459_v1 = vld [vmem:[#allocation5 + $0x50] sm:$0xff] }
 0x255   :  { %v1748_v37 = vpop.f32.mrf.mxu2  ;;  %v1797_v35 = vpop.f32.mrf.mxu3 }
 0x256   :  { %v1749_v38 = vadd.f32 %v1748_v37, %v1700_v47  ;;  %2431 = vmatpush.bf16.msrb.mxu1 %v3459_v1 }
 0x258   :  { %v1798_v30 = vadd.f32 %v1797_v35, %v1749_v38  ;;  %v1655_v25 = vpop.f32.mrf.mxu0  ;;  %v1704_v53 = vpop.f32.mrf.mxu1 }
 0x259   :  { %v1656_v2 = vadd.f32 %v1655_v25, %v4067_v46 }
 0x25a   :  { %v2043_v8 = vmax.f32 %v1798_v30, 0.0  ;;  %1946 = vmatmul.bf16.gmra.mxu2 %v3838_v23  ;;  %1995 = vmatmul.bf16.gmra.mxu3 %v3840_v24 }
 0x25b   :  { %v1705_v9 = vadd.f32 %v1704_v53, %v1656_v2  ;;  %2432 = vmatpush.bf16.msrb.mxu1 %v3458_v55 }
 0x25c   :  { %v4099_v4 = vpack.c.bf16 %v2043_v8, %v2039_v54  ;;  %v3451_v8 = vld [vmem:[#allocation5 + $0x10] sm:$0xff] }
 0x25d   :  { %v1751_v10 = vpop.f32.mrf.mxu2  ;;  %v1800_v45 = vpop.f32.mrf.mxu3  ;;  %2382 = vmatpush.bf16.msrb.mxu0 %v3451_v8 }
 0x25e   :  { %v1752_v28 = vadd.f32 %v1751_v10, %v1703_v40 }
 0x260   :  { %v1801_v44 = vadd.f32 %v1800_v45, %v1752_v28  ;;  %v1658_v57 = vpop.f32.mrf.mxu0  ;;  %v1707_v15 = vpop.f32.mrf.mxu1 }
 0x261   :  { %v1659_v47 = vadd.f32 %v1658_v57, %v4067_v46 }
 0x262   :  { %v2047_v51 = vmax.f32 %v1801_v44, 0.0 }
 0x263   :  { %v1708_v33 = vadd.f32 %v1707_v15, %v1659_v47  ;;  %1853 = vmatmul.bf16.gmra.mxu0 %v3848_v56  ;;  %1902 = vmatmul.bf16.gmra.mxu1 %v3851_v60  ;;  %v3467_v56 = vld [vmem:[#allocation5 + $0x90] sm:$0xff] }
 0x264   :  { %2480 = vmatpush.bf16.msrb.mxu2 %v3467_v56 }
 0x265   :  { %v1753_v23 = vpop.f32.mrf.mxu2  ;;  %v1802_v7 = vpop.f32.mrf.mxu3 }
 0x266   :  { %v1754_v24 = vadd.f32 %v1753_v23, %v1705_v9  ;;  %v3475_v9 = vld [vmem:[#allocation5 + $0xd0] sm:$0xff] }
 0x267   :  { %2529 = vmatpush.bf16.msrb.mxu3 %v3475_v9 }
 0x268   :  { %v1803_v39 = vadd.f32 %v1802_v7, %v1754_v24  ;;  %v1660_v43 = vpop.f32.mrf.mxu0  ;;  %v1709_v20 = vpop.f32.mrf.mxu1 }
 0x269   :  { %v1661_v50 = vadd.f32 %v1660_v43, %v4067_v46 }
 0x26a   :  { %v2051_v40 = vmax.f32 %v1803_v39, 0.0  ;;  %1951 = vmatmul.bf16.gmra.mxu2 %v3858_v16  ;;  %2000 = vmatmul.bf16.gmra.mxu3 %v3860_v17 }
 0x26b   :  { %v1710_v37 = vadd.f32 %v1709_v20, %v1661_v50  ;;  %v3449_v50 = vld [vmem:[#allocation5] sm:$0xff] }
 0x26c   :  { %v4107_v60 = vpack.c.bf16 %v2051_v40, %v2047_v51  ;;  %v3457_v20 = vld [vmem:[#allocation5 + $0x40] sm:$0xff]  ;;  %v3474_v40 = vld [vmem:[#allocation5 + $0xc8] sm:$0xff] }
 0x26d   :  { %v1756_v38 = vpop.f32.mrf.mxu2  ;;  %v1805_v30 = vpop.f32.mrf.mxu3  ;;  %2433 = vmatpush.bf16.msrb.mxu1 %v3457_v20  ;;  %2530 = vmatpush.bf16.msrb.mxu3 %v3474_v40 }
 0x26e   :  { %v1757_v35 = vadd.f32 %v1756_v38, %v1708_v33 }
 0x270   :  { %v1806_v25 = vadd.f32 %v1805_v30, %v1757_v35  ;;  %v1663_v2 = vpop.f32.mrf.mxu0  ;;  %v1712_v54 = vpop.f32.mrf.mxu1  ;;  %v3465_v35 = vld [vmem:[#allocation5 + $0x80] sm:$0xff] }
 0x271   :  { %v1664_v53 = vadd.f32 %v1663_v2, %v4067_v46 }
 0x272   :  { %v2055_v15 = vmax.f32 %v1806_v25, 0.0 }
 0x273   :  { %v1713_v10 = vadd.f32 %v1712_v54, %v1664_v53  ;;  %1858 = vmatmul.bf16.gmra.mxu0 %v3868_v49  ;;  %1907 = vmatmul.bf16.gmra.mxu1 %v3871_v52  ;;  %v3466_v49 = vld [vmem:[#allocation5 + $0x88] sm:$0xff] }
 0x274   :  { %v3450_v52 = vld [vmem:[#allocation5 + $0x8] sm:$0xff]  ;;  %2481 = vmatpush.bf16.msrb.mxu2 %v3466_v49 }
 0x275   :  { %v1758_v16 = vpop.f32.mrf.mxu2  ;;  %v1807_v28 = vpop.f32.mrf.mxu3  ;;  %2383 = vmatpush.bf16.msrb.mxu0 %v3450_v52 }
 0x276   :  { %v1759_v17 = vadd.f32 %v1758_v16, %v1710_v37 }
 0x278   :  { %v1808_v45 = vadd.f32 %v1807_v28, %v1759_v17  ;;  %v1665_v44 = vpop.f32.mrf.mxu0  ;;  %v1714_v47 = vpop.f32.mrf.mxu1  ;;  %2482 = vmatpush.bf16.msrb.mxu2 %v3465_v35 }
 0x279   :  { %v1666_v57 = vadd.f32 %v1665_v44, %v4067_v46  ;;  %2384 = vmatpush.bf16.msrb.mxu0 %v3449_v50  ;;  %v3473_v44 = vld [vmem:[#allocation5 + $0xc0] sm:$0xff] }
 0x27a   :  { %v2059_v62 = vmax.f32 %v1808_v45, 0.0  ;;  %1956 = vmatmul.bf16.gmra.mxu2 %v3878_v13  ;;  %2005 = vmatmul.bf16.gmra.mxu3 %v3880_v14 }
 0x27b   :  { %v1715_v32 = vadd.f32 %v1714_v47, %v1666_v57  ;;  %2531 = vmatpush.bf16.msrb.mxu3 %v3473_v44 }
 0x27c   :  { %v4115_v33 = vpack.c.bf16 %v2059_v62, %v2055_v15 }
 0x27d   :  { %v1761_v23 = vpop.f32.mrf.mxu2  ;;  %v1810_v7 = vpop.f32.mrf.mxu3 }
 0x27e   :  { %v1762_v24 = vadd.f32 %v1761_v23, %v1713_v10 }
 0x280   :  { %v1811_v39 = vadd.f32 %v1810_v7, %v1762_v24  ;;  %v1668_v43 = vpop.f32.mrf.mxu0  ;;  %v1717_v51 = vpop.f32.mrf.mxu1 }
 0x281   :  { %v1669_v13 = vadd.f32 %v1668_v43, %v4067_v46 }
 0x282   :  { %v2063_v54 = vmax.f32 %v1811_v39, 0.0 }
 0x283   :  { %v1718_v14 = vadd.f32 %v1717_v51, %v1669_v13  ;;  %1863 = vmatmul.bf16.gmra.mxu0 %v3888_v61  ;;  %1912 = vmatmul.bf16.gmra.mxu1 %v3891_v63 }
 0x285   :  { %v1763_v37 = vpop.f32.mrf.mxu2  ;;  %v1812_v38 = vpop.f32.mrf.mxu3 }
 0x286   :  { %v1764_v56 = vadd.f32 %v1763_v37, %v1715_v32 }
 0x288   :  { %v1813_v30 = vadd.f32 %v1812_v38, %v1764_v56  ;;  %v1670_v25 = vpop.f32.mrf.mxu0  ;;  %v1719_v53 = vpop.f32.mrf.mxu1 }
 0x289   :  { %v1671_v2 = vadd.f32 %v1670_v25, %v4067_v46 }
 0x28a   :  { %v2067_v8 = vmax.f32 %v1813_v30, 0.0  ;;  %1961 = vmatmul.bf16.gmra.mxu2 %v3898_v21  ;;  %2010 = vmatmul.bf16.gmra.mxu3 %v3900_v22 }
 0x28b   :  { %v1720_v9 = vadd.f32 %v1719_v53, %v1671_v2 }
 0x28c   :  { %v4123_v61 = vpack.c.bf16 %v2067_v8, %v2063_v54 }
 0x28d   :  { %v1766_v63 = vpop.f32.mrf.mxu2  ;;  %v1815_v10 = vpop.f32.mrf.mxu3 }
 0x28e   :  { %v1767_v1 = vadd.f32 %v1766_v63, %v1718_v14 }
 0x290   :  { %v1816_v16 = vadd.f32 %v1815_v10, %v1767_v1  ;;  %v1673_v17 = vpop.f32.mrf.mxu0  ;;  %v1722_v45 = vpop.f32.mrf.mxu1 }
 0x291   :  { %v1674_v28 = vadd.f32 %v1673_v17, %v4067_v46 }
 0x292   :  { %v2071_v52 = vmax.f32 %v1816_v16, 0.0 }
 0x293   :  { %v1723_v57 = vadd.f32 %v1722_v45, %v1674_v28  ;;  %1868 = vmatmul.bf16.gmra.mxu0 %v3908_v0  ;;  %1917 = vmatmul.bf16.gmra.mxu1 %v3911_v3 }
 0x295   :  { %v1768_v21 = vpop.f32.mrf.mxu2  ;;  %v1817_v22 = vpop.f32.mrf.mxu3 }
 0x296   :  { %v1769_v47 = vadd.f32 %v1768_v21, %v1720_v9 }
 0x298   :  { %v1818_v15 = vadd.f32 %v1817_v22, %v1769_v47  ;;  %v1675_v62 = vpop.f32.mrf.mxu0  ;;  %v1724_v49 = vpop.f32.mrf.mxu1 }
 0x299   :  { %v1676_v32 = vadd.f32 %v1675_v62, %v4067_v46 }
 0x29a   :  { %v2075_v55 = vmax.f32 %v1818_v15, 0.0  ;;  %1966 = vmatmul.bf16.gmra.mxu2 %v3918_v27  ;;  %2015 = vmatmul.bf16.gmra.mxu3 %v3925_v29  ;;  %v4136_v27 = vperm.slane %v4064_v19, 3 }
 0x29b   :  { %v1725_v23 = vadd.f32 %v1724_v49, %v1676_v32 }
 0x29c   :  { %v4131_v24 = vpack.c.bf16 %v2075_v55, %v2071_v52 }
 0x29d   :  { %v1771_v0 = vpop.f32.mrf.mxu2  ;;  %v1820_v7 = vpop.f32.mrf.mxu3 }
 0x29e   :  { %v1772_v3 = vadd.f32 %v1771_v0, %v1723_v57 }
 0x2a0   :  { %v1821_v39 = vadd.f32 %v1820_v7, %v1772_v3  ;;  %v1834_v43 = vpop.f32.mrf.mxu0  ;;  %v1883_v50 = vpop.f32.mrf.mxu1 }
 0x2a1   :  { %v1835_v56 = vadd.f32 %v1834_v43, %v4136_v27 }
 0x2a2   :  { %v2079_v14 = vmax.f32 %v1821_v39, 0.0 }
 0x2a3   :  { %2385 = vmatmul.bf16.vlgmr.msrb.gmra.mxu0 %v3944_v11  ;;  %2434 = vmatmul.bf16.vlgmr.msrb.gmra.mxu1 %v4011_v48  ;;  %v1884_v48 = vadd.f32 %v1883_v50, %v1835_v56 }
 0x2a5   :  { %v1773_v46 = vpop.f32.mrf.mxu2  ;;  %v1822_v13 = vpop.f32.mrf.mxu3 }
 0x2a6   :  { %v1774_v20 = vadd.f32 %v1773_v46, %v1725_v23 }
 0x2a8   :  { %v1823_v51 = vadd.f32 %v1822_v13, %v1774_v20  ;;  %v1836_v29 = vpop.f32.mrf.mxu0  ;;  %v1885_v40 = vpop.f32.mrf.mxu1 }
 0x2a9   :  { %v1837_v30 = vadd.f32 %v1836_v29, %v4136_v27 }
 0x2aa   :  { %v2083_v37 = vmax.f32 %v1823_v51, 0.0  ;;  %2483 = vmatmul.bf16.vlgmr.msrb.gmra.mxu2 %v4083_v36 }
 0x2ab   :  { %v1886_v53 = vadd.f32 %v1885_v40, %v1837_v30 }
 0x2ac   :  { %v4140_v38 = vpack.c.bf16 %v2083_v37, %v2079_v14 }
 0x2ad   :  { %v1932_v11 = vpop.f32.mrf.mxu2  ;;  %v1981_v35 = vpop.f32.mrf.mxu3 }
 0x2ae   :  { %v1933_v19 = vadd.f32 %v1932_v11, %v1884_v48 }
 0x2b0   :  { %v1839_v25 = vpop.f32.mrf.mxu0  ;;  %v1888_v2 = vpop.f32.mrf.mxu1  ;;  %v1982_v8 = vadd.f32 %v1981_v35, %v1933_v19 }
 0x2b1   :  { %v1840_v28 = vadd.f32 %v1839_v25, %v4136_v27 }
 0x2b2   :  { %v2024_v16 = vmax.f32 %v1982_v8, 0.0 }
 0x2b3   :  { %2390 = vmatmul.bf16.gmra.mxu0 %v3952_v26  ;;  %2439 = vmatmul.bf16.gmra.mxu1 %v4019_v41  ;;  %v1889_v26 = vadd.f32 %v1888_v2, %v1840_v28 }
 0x2b5   :  { %v1934_v54 = vpop.f32.mrf.mxu2  ;;  %v1983_v9 = vpop.f32.mrf.mxu3 }
 0x2b6   :  { %v1935_v36 = vadd.f32 %v1934_v54, %v1886_v53 }
 0x2b8   :  { %v1984_v63 = vadd.f32 %v1983_v9, %v1935_v36  ;;  %v1841_v1 = vpop.f32.mrf.mxu0  ;;  %v1890_v10 = vpop.f32.mrf.mxu1  ;;  %v4214_v36 = vld [vmem:[#allocation11_spill] sm:$0xff] }
 0x2b9   :  { %v1842_v41 = vadd.f32 %v1841_v1, %v4136_v27 }
 0x2ba   :  { %v2028_v17 = vmax.f32 %v1984_v63, 0.0  ;;  %2488 = vmatmul.bf16.gmra.mxu2 %v4091_v18 }
 0x2bb   :  { %v1891_v15 = vadd.f32 %v1890_v10, %v1842_v41 }
 0x2bc   :  { %v2088_v45 = vpack.c.bf16 %v2028_v17, %v2024_v16 }
 0x2bd   :  { %v1937_v44 = vpop.f32.mrf.mxu2  ;;  %v1986_v57 = vpop.f32.mrf.mxu3 }
 0x2be   :  { %2532 = vmatmul.bf16.vlgmr.msrb.gmra.mxu3 %v2088_v45  ;;  %v1938_v22 = vadd.f32 %v1937_v44, %v1889_v26 }
 0x2c0   :  { %v1844_v21 = vpop.f32.mrf.mxu0  ;;  %v1893_v47 = vpop.f32.mrf.mxu1  ;;  %v1987_v32 = vadd.f32 %v1986_v57, %v1938_v22 }
 0x2c1   :  { %v1845_v7 = vadd.f32 %v1844_v21, %v4136_v27 }
 0x2c2   :  { %v2032_v0 = vmax.f32 %v1987_v32, 0.0  ;;  %v4215_v32 = vld [vmem:[#allocation12_spill] sm:$0xff] }
 0x2c3   :  { %2395 = vmatmul.bf16.gmra.mxu0 %v3960_v34  ;;  %2444 = vmatmul.bf16.gmra.mxu1 %v4027_v31  ;;  %v1894_v34 = vadd.f32 %v1893_v47, %v1845_v7 }
 0x2c5   :  { %v1939_v62 = vpop.f32.mrf.mxu2  ;;  %v1988_v49 = vpop.f32.mrf.mxu3 }
 0x2c6   :  { %v1940_v18 = vadd.f32 %v1939_v62, %v1891_v15 }
 0x2c8   :  { %v1989_v52 = vadd.f32 %v1988_v49, %v1940_v18  ;;  %v1846_v55 = vpop.f32.mrf.mxu0  ;;  %v1895_v23 = vpop.f32.mrf.mxu1 }
 0x2c9   :  { %v1847_v31 = vadd.f32 %v1846_v55, %v4136_v27 }
 0x2ca   :  { %v2036_v3 = vmax.f32 %v1989_v52, 0.0  ;;  %2493 = vmatmul.bf16.gmra.mxu2 %v4099_v4 }
 0x2cb   :  { %v1896_v51 = vadd.f32 %v1895_v23, %v1847_v31 }
 0x2cc   :  { %v2092_v39 = vpack.c.bf16 %v2036_v3, %v2032_v0 }
 0x2cd   :  { %v1942_v43 = vpop.f32.mrf.mxu2  ;;  %v1991_v50 = vpop.f32.mrf.mxu3 }
 0x2ce   :  { %2537 = vmatmul.bf16.gmra.mxu3 %v2092_v39  ;;  %v1943_v13 = vadd.f32 %v1942_v43, %v1894_v34 }
 0x2d0   :  { %v1849_v46 = vpop.f32.mrf.mxu0  ;;  %v1898_v20 = vpop.f32.mrf.mxu1  ;;  %v1992_v40 = vadd.f32 %v1991_v50, %v1943_v13 }
 0x2d1   :  { %v1850_v30 = vadd.f32 %v1849_v46, %v4136_v27 }
 0x2d2   :  { %v2040_v35 = vmax.f32 %v1992_v40, 0.0 }
 0x2d3   :  { %2400 = vmatmul.bf16.gmra.mxu0 %v3968_v42  ;;  %2449 = vmatmul.bf16.gmra.mxu1 %v4035_v12  ;;  %v1899_v42 = vadd.f32 %v1898_v20, %v1850_v30 }
 0x2d5   :  { %v1944_v29 = vpop.f32.mrf.mxu2  ;;  %v1993_v14 = vpop.f32.mrf.mxu3 }
 0x2d6   :  { %v1945_v4 = vadd.f32 %v1944_v29, %v1896_v51  ;;  %v4216_v29 = vld [vmem:[#allocation13_spill] sm:$0xff] }
 0x2d8   :  { %v1994_v37 = vadd.f32 %v1993_v14, %v1945_v4  ;;  %v1851_v56 = vpop.f32.mrf.mxu0  ;;  %v1900_v11 = vpop.f32.mrf.mxu1 }
 0x2d9   :  { %v1852_v12 = vadd.f32 %v1851_v56, %v4136_v27 }
 0x2da   :  { %v2044_v48 = vmax.f32 %v1994_v37, 0.0  ;;  %2498 = vmatmul.bf16.gmra.mxu2 %v4107_v60 }
 0x2db   :  { %v1901_v9 = vadd.f32 %v1900_v11, %v1852_v12 }
 0x2dc   :  { %v2096_v25 = vpack.c.bf16 %v2044_v48, %v2040_v35 }
 0x2dd   :  { %v1947_v2 = vpop.f32.mrf.mxu2  ;;  %v1996_v19 = vpop.f32.mrf.mxu3 }
 0x2de   :  { %2542 = vmatmul.bf16.gmra.mxu3 %v2096_v25  ;;  %v1948_v8 = vadd.f32 %v1947_v2, %v1899_v42 }
 0x2e0   :  { %v1854_v53 = vpop.f32.mrf.mxu0  ;;  %v1903_v54 = vpop.f32.mrf.mxu1  ;;  %v1997_v1 = vadd.f32 %v1996_v19, %v1948_v8 }
 0x2e1   :  { %v1855_v57 = vadd.f32 %v1854_v53, %v4136_v27 }
 0x2e2   :  { %v2048_v45 = vmax.f32 %v1997_v1, 0.0 }
 0x2e3   :  { %2405 = vmatmul.bf16.gmra.mxu0 %v4214_v36  ;;  %2454 = vmatmul.bf16.gmra.mxu1 %v4043_v6  ;;  %v1904_v47 = vadd.f32 %v1903_v54, %v1855_v57  ;;  %v4217_v36 = vld [vmem:[#allocation14_spill] sm:$0xff] }
 0x2e5   :  { %v1949_v63 = vpop.f32.mrf.mxu2  ;;  %v1998_v10 = vpop.f32.mrf.mxu3 }
 0x2e6   :  { %v1950_v60 = vadd.f32 %v1949_v63, %v1901_v9 }
 0x2e8   :  { %v1999_v16 = vadd.f32 %v1998_v10, %v1950_v60  ;;  %v1856_v17 = vpop.f32.mrf.mxu0  ;;  %v1905_v28 = vpop.f32.mrf.mxu1 }
 0x2e9   :  { %v1857_v6 = vadd.f32 %v1856_v17, %v4136_v27 }
 0x2ea   :  { %v2052_v44 = vmax.f32 %v1999_v16, 0.0  ;;  %2503 = vmatmul.bf16.gmra.mxu2 %v4115_v33 }
 0x2eb   :  { %v1906_v18 = vadd.f32 %v1905_v28, %v1857_v6 }
 0x2ec   :  { %v2100_v26 = vpack.c.bf16 %v2052_v44, %v2048_v45 }
 0x2ed   :  { %v1952_v41 = vpop.f32.mrf.mxu2  ;;  %v2001_v21 = vpop.f32.mrf.mxu3 }
 0x2ee   :  { %2547 = vmatmul.bf16.gmra.mxu3 %v2100_v26  ;;  %v1953_v62 = vadd.f32 %v1952_v41, %v1904_v47 }
 0x2f0   :  { %v1859_v22 = vpop.f32.mrf.mxu0  ;;  %v1908_v15 = vpop.f32.mrf.mxu1  ;;  %v2002_v52 = vadd.f32 %v2001_v21, %v1953_v62 }
 0x2f1   :  { %v1860_v43 = vadd.f32 %v1859_v22, %v4136_v27 }
 0x2f2   :  { %v2056_v7 = vmax.f32 %v2002_v52, 0.0 }
 0x2f3   :  { %2410 = vmatmul.bf16.gmra.mxu0 %v4215_v32  ;;  %2459 = vmatmul.bf16.gmra.mxu1 %v4051_v5  ;;  %v1909_v46 = vadd.f32 %v1908_v15, %v1860_v43 }
 0x2f5   :  { %v1954_v49 = vpop.f32.mrf.mxu2  ;;  %v2003_v55 = vpop.f32.mrf.mxu3 }
 0x2f6   :  { %v1955_v33 = vadd.f32 %v1954_v49, %v1906_v18 }
 0x2f8   :  { %v2004_v23 = vadd.f32 %v2003_v55, %v1955_v33  ;;  %v1861_v0 = vpop.f32.mrf.mxu0  ;;  %v1910_v3 = vpop.f32.mrf.mxu1 }
 0x2f9   :  { %v1862_v5 = vadd.f32 %v1861_v0, %v4136_v27 }
 0x2fa   :  { %v2060_v39 = vmax.f32 %v2004_v23, 0.0  ;;  %2508 = vmatmul.bf16.gmra.mxu2 %v4123_v61 }
 0x2fb   :  { %v1911_v40 = vadd.f32 %v1910_v3, %v1862_v5 }
 0x2fc   :  { %v2104_v50 = vpack.c.bf16 %v2060_v39, %v2056_v7 }
 0x2fd   :  { %v1957_v34 = vpop.f32.mrf.mxu2  ;;  %v2006_v31 = vpop.f32.mrf.mxu3 }
 0x2fe   :  { %2552 = vmatmul.bf16.gmra.mxu3 %v2104_v50  ;;  %v1958_v51 = vadd.f32 %v1957_v34, %v1909_v46 }
 0x300   :  { %v1864_v20 = vpop.f32.mrf.mxu0  ;;  %v1913_v13 = vpop.f32.mrf.mxu1  ;;  %v2007_v14 = vadd.f32 %v2006_v31, %v1958_v51 }
 0x301   :  { %v1865_v25 = vadd.f32 %v1864_v20, %v4136_v27 }
 0x302   :  { %v2064_v48 = vmax.f32 %v2007_v14, 0.0 }
 0x303   :  { %2415 = vmatmul.bf16.gmra.mxu0 %v4216_v29  ;;  %2464 = vmatmul.bf16.gmra.mxu1 %v4059_v59  ;;  %v1914_v12 = vadd.f32 %v1913_v13, %v1865_v25 }
 0x305   :  { %v1959_v4 = vpop.f32.mrf.mxu2  ;;  %v2008_v37 = vpop.f32.mrf.mxu3 }
 0x306   :  { %v1960_v61 = vadd.f32 %v1959_v4, %v1911_v40 }
 0x308   :  { %v2009_v56 = vadd.f32 %v2008_v37, %v1960_v61  ;;  %v1866_v11 = vpop.f32.mrf.mxu0  ;;  %v1915_v35 = vpop.f32.mrf.mxu1 }
 0x309   :  { %v1867_v59 = vadd.f32 %v1866_v11, %v4136_v27 }
 0x30a   :  { %v2068_v30 = vmax.f32 %v2009_v56, 0.0  ;;  %2513 = vmatmul.bf16.gmra.mxu2 %v4131_v24 }
 0x30b   :  { %v1916_v9 = vadd.f32 %v1915_v35, %v1867_v59 }
 0x30c   :  { %v2108_v2 = vpack.c.bf16 %v2068_v30, %v2064_v48 }
 0x30d   :  { %v1962_v19 = vpop.f32.mrf.mxu2  ;;  %v2011_v42 = vpop.f32.mrf.mxu3 }
 0x30e   :  { %2557 = vmatmul.bf16.gmra.mxu3 %v2108_v2  ;;  %v1963_v8 = vadd.f32 %v1962_v19, %v1914_v12 }
 0x310   :  { %v1869_v53 = vpop.f32.mrf.mxu0  ;;  %v1918_v54 = vpop.f32.mrf.mxu1  ;;  %v2012_v1 = vadd.f32 %v2011_v42, %v1963_v8 }
 0x311   :  { %v1870_v44 = vadd.f32 %v1869_v53, %v4136_v27 }
 0x312   :  { %v2072_v28 = vmax.f32 %v2012_v1, 0.0 }
 0x313   :  { %2420 = vmatmul.bf16.gmra.mxu0 %v4217_v36  ;;  %2469 = vmatmul.bf16.gmra.mxu1 %v4075_v58  ;;  %v1919_v21 = vadd.f32 %v1918_v54, %v1870_v44 }
 0x315   :  { %v1964_v63 = vpop.f32.mrf.mxu2  ;;  %v2013_v60 = vpop.f32.mrf.mxu3 }
 0x316   :  { %v1965_v24 = vadd.f32 %v1964_v63, %v1916_v9 }
 0x318   :  { %v2014_v10 = vadd.f32 %v2013_v60, %v1965_v24  ;;  %v1871_v16 = vpop.f32.mrf.mxu0  ;;  %v1920_v17 = vpop.f32.mrf.mxu1 }
 0x319   :  { %v1872_v58 = vadd.f32 %v1871_v16, %v4136_v27  ;;  %v4181_v27 = vld [vmem:[%s4208_s6] ss:$0 sm:$0xff]  ;;  %s3576_s6 = smov [#allocation7]  }
 0x31a   :  { %v2076_v45 = vmax.f32 %v2014_v10, 0.0  ;;  %2518 = vmatmul.bf16.gmra.mxu2 %v4140_v38  ;;  %s2593_s30 = sshll.u32 %s3576_s6, 4  ;;  %s2594_s30 = int_to_ptr.vmem [resolvable:$true] %s2593_s30 }
 0x31b   :  { %v1921_v15 = vadd.f32 %v1920_v17, %v1872_v58 }
 0x31c   :  { %v2112_v57 = vpack.c.bf16 %v2076_v45, %v2072_v28 }
 0x31d   :  { %v1967_v26 = vpop.f32.mrf.mxu2  ;;  %v2016_v41 = vpop.f32.mrf.mxu3 }
 0x31e   :  { %2562 = vmatmul.bf16.gmra.mxu3 %v2112_v57  ;;  %v1968_v22 = vadd.f32 %v1967_v26, %v1919_v21 }
 0x320   :  { %v2386_v47 = vpop.f32.mrf.mxu0  ;;  %v2435_v6 = vpop.f32.mrf.mxu1  ;;  %v2017_v32 = vadd.f32 %v2016_v41, %v1968_v22 }
 0x321   :  { %v2387_v34 = vadd.f32 %v4181_v27, %v2386_v47 }
 0x322   :  { %v2080_v55 = vmax.f32 %v2017_v32, 0.0 }
 0x323   :  { %v2436_v5 = vadd.f32 %v2435_v6, %v2387_v34 }
 0x325   :  { %v1969_v62 = vpop.f32.mrf.mxu2  ;;  %v2018_v49 = vpop.f32.mrf.mxu3 }
 0x326   :  { %v1970_v18 = vadd.f32 %v1969_v62, %v1921_v15 }
 0x328   :  { %v2019_v52 = vadd.f32 %v2018_v49, %v1970_v18  ;;  %v2388_v33 = vpop.f32.mrf.mxu0  ;;  %v2437_v38 = vpop.f32.mrf.mxu1 }
 0x329   :  { %v2389_v29 = vadd.f32 %v4181_v27, %v2388_v33 }
 0x32a   :  { %v2084_v23 = vmax.f32 %v2019_v52, 0.0 }
 0x32b   :  { %v2438_v14 = vadd.f32 %v2437_v38, %v2389_v29 }
 0x32c   :  { %v2116_v0 = vpack.c.bf16 %v2084_v23, %v2080_v55 }
 0x32d   :  { %v2484_v3 = vpop.f32.mrf.mxu2 }
 0x32e   :  { %2567 = vmatmul.bf16.gmra.mxu3 %v2116_v0  ;;  %v2485_v20 = vadd.f32 %v2484_v3, %v2436_v5 }
 0x330   :  { %v2391_v7 = vpop.f32.mrf.mxu0  ;;  %v2440_v39 = vpop.f32.mrf.mxu1 }
 0x331   :  { %v2392_v11 = vadd.f32 %v4181_v27, %v2391_v7 }
 0x333   :  { %v2441_v25 = vadd.f32 %v2440_v39, %v2392_v11 }
 0x335   :  { %v2486_v43 = vpop.f32.mrf.mxu2 }
 0x336   :  { %v2487_v37 = vadd.f32 %v2486_v43, %v2438_v14 }
 0x338   :  { %v2393_v50 = vpop.f32.mrf.mxu0  ;;  %v2442_v31 = vpop.f32.mrf.mxu1 }
 0x339   :  { %v2394_v12 = vadd.f32 %v4181_v27, %v2393_v50 }
 0x33b   :  { %v2443_v8 = vadd.f32 %v2442_v31, %v2394_v12 }
 0x33d   :  { %v2489_v46 = vpop.f32.mrf.mxu2 }
 0x33e   :  { %v2490_v2 = vadd.f32 %v2489_v46, %v2441_v25 }
 0x340   :  { %v2396_v13 = vpop.f32.mrf.mxu0  ;;  %v2445_v61 = vpop.f32.mrf.mxu1 }
 0x341   :  { %v2533_v51 = vpop.f32.mrf.mxu3  ;;  %v2397_v63 = vadd.f32 %v4181_v27, %v2396_v13 }
 0x342   :  { %v2534_v40 = vadd.f32 %v2533_v51, %v2485_v20 }
 0x343   :  { %v2446_v10 = vadd.f32 %v2445_v61, %v2397_v63 }
 0x344   :  { %2573 = vst [vmem:[#allocation7] sm:$0xff] %v2534_v40 }
 0x345   :  { %v2491_v4 = vpop.f32.mrf.mxu2 }
 0x346   :  { %v2492_v36 = vadd.f32 %v2491_v4, %v2443_v8 }
 0x348   :  { %v2398_v48 = vpop.f32.mrf.mxu0  ;;  %v2447_v19 = vpop.f32.mrf.mxu1 }
 0x349   :  { %v2535_v56 = vpop.f32.mrf.mxu3  ;;  %v2399_v45 = vadd.f32 %v4181_v27, %v2398_v48 }
 0x34a   :  { %v2536_v35 = vadd.f32 %v2535_v56, %v2487_v37 }
 0x34b   :  { %v2448_v41 = vadd.f32 %v2447_v19, %v2399_v45 }
 0x34c   :  { %2574 = vst [vmem:[#allocation7 + $0x8] sm:$0xff] %v2536_v35 }
 0x34d   :  { %v2494_v30 = vpop.f32.mrf.mxu2 }
 0x34e   :  { %v2495_v17 = vadd.f32 %v2494_v30, %v2446_v10 }
 0x350   :  { %v2401_v53 = vpop.f32.mrf.mxu0  ;;  %v2450_v1 = vpop.f32.mrf.mxu1 }
 0x351   :  { %v2538_v42 = vpop.f32.mrf.mxu3  ;;  %v2402_v6 = vadd.f32 %v4181_v27, %v2401_v53 }
 0x352   :  { %v2539_v59 = vadd.f32 %v2538_v42, %v2490_v2 }
 0x353   :  { %v2451_v15 = vadd.f32 %v2450_v1, %v2402_v6 }
 0x354   :  { %2575 = vst [vmem:[#allocation7 + $0x10] sm:$0xff] %v2539_v59 }
 0x355   :  { %v2496_v54 = vpop.f32.mrf.mxu2 }
 0x356   :  { %v2497_v21 = vadd.f32 %v2496_v54, %v2448_v41 }
 0x358   :  { %v2403_v16 = vpop.f32.mrf.mxu0  ;;  %v2452_v57 = vpop.f32.mrf.mxu1 }
 0x359   :  { %v2540_v9 = vpop.f32.mrf.mxu3  ;;  %v2404_v52 = vadd.f32 %v4181_v27, %v2403_v16 }
 0x35a   :  { %v2541_v24 = vadd.f32 %v2540_v9, %v2492_v36 }
 0x35b   :  { %v2453_v55 = vadd.f32 %v2452_v57, %v2404_v52 }
 0x35c   :  { %2576 = vst [vmem:[#allocation7 + $0x18] sm:$0xff] %v2541_v24 }
 0x35d   :  { %v2499_v60 = vpop.f32.mrf.mxu2 }
 0x35e   :  { %v2500_v18 = vadd.f32 %v2499_v60, %v2451_v15 }
 0x360   :  { %v2406_v58 = vpop.f32.mrf.mxu0  ;;  %v2455_v62 = vpop.f32.mrf.mxu1 }
 0x361   :  { %v2543_v28 = vpop.f32.mrf.mxu3  ;;  %v2407_v39 = vadd.f32 %v4181_v27, %v2406_v58 }
 0x362   :  { %v2544_v44 = vadd.f32 %v2543_v28, %v2495_v17 }
 0x363   :  { %v2456_v34 = vadd.f32 %v2455_v62, %v2407_v39 }
 0x364   :  { %2577 = vst [vmem:[#allocation7 + $0x20] sm:$0xff] %v2544_v44 }
 0x365   :  { %v2501_v26 = vpop.f32.mrf.mxu2 }
 0x366   :  { %v2502_v23 = vadd.f32 %v2501_v26, %v2453_v55 }
 0x368   :  { %v2408_v38 = vpop.f32.mrf.mxu0  ;;  %v2457_v0 = vpop.f32.mrf.mxu1 }
 0x369   :  { %v2545_v47 = vpop.f32.mrf.mxu3  ;;  %v2409_v5 = vadd.f32 %v4181_v27, %v2408_v38 }
 0x36a   :  { %v2546_v22 = vadd.f32 %v2545_v47, %v2497_v21 }
 0x36b   :  { %v2458_v29 = vadd.f32 %v2457_v0, %v2409_v5 }
 0x36c   :  { %2578 = vst [vmem:[#allocation7 + $0x28] sm:$0xff] %v2546_v22 }
 0x36d   :  { %v2504_v32 = vpop.f32.mrf.mxu2 }
 0x36e   :  { %v2505_v31 = vadd.f32 %v2504_v32, %v2456_v34 }
 0x370   :  { %v2411_v50 = vpop.f32.mrf.mxu0  ;;  %v2460_v20 = vpop.f32.mrf.mxu1 }
 0x371   :  { %v2548_v49 = vpop.f32.mrf.mxu3  ;;  %v2412_v61 = vadd.f32 %v4181_v27, %v2411_v50 }
 0x372   :  { %v2549_v33 = vadd.f32 %v2548_v49, %v2500_v18 }
 0x373   :  { %v2461_v35 = vadd.f32 %v2460_v20, %v2412_v61 }
 0x374   :  { %2579 = vst [vmem:[#allocation7 + $0x30] sm:$0xff] %v2549_v33 }
 0x375   :  { %v2506_v3 = vpop.f32.mrf.mxu2 }
 0x376   :  { %v2507_v4 = vadd.f32 %v2506_v3, %v2458_v29 }
 0x378   :  { %v2413_v40 = vpop.f32.mrf.mxu0  ;;  %v2462_v56 = vpop.f32.mrf.mxu1 }
 0x379   :  { %v2550_v7 = vpop.f32.mrf.mxu3  ;;  %v2414_v2 = vadd.f32 %v4181_v27, %v2413_v40 }
 0x37a   :  { %v2551_v43 = vadd.f32 %v2550_v7, %v2502_v23 }
 0x37b   :  { %v2463_v42 = vadd.f32 %v2462_v56, %v2414_v2 }
 0x37c   :  { %2580 = vst [vmem:[#allocation7 + $0x38] sm:$0xff] %v2551_v43 }
 0x37d   :  { %v2509_v51 = vpop.f32.mrf.mxu2 }
 0x37e   :  { %v2510_v48 = vadd.f32 %v2509_v51, %v2461_v35 }
 0x380   :  { %v2416_v30 = vpop.f32.mrf.mxu0  ;;  %v2465_v12 = vpop.f32.mrf.mxu1 }
 0x381   :  { %v2553_v46 = vpop.f32.mrf.mxu3  ;;  %v2417_v8 = vadd.f32 %v4181_v27, %v2416_v30 }
 0x382   :  { %v2554_v13 = vadd.f32 %v2553_v46, %v2505_v31 }
 0x383   :  { %v2466_v63 = vadd.f32 %v2465_v12, %v2417_v8 }
 0x384   :  { %2581 = vst [vmem:[#allocation7 + $0x40] sm:$0xff] %v2554_v13 }
 0x385   :  { %v2511_v11 = vpop.f32.mrf.mxu2 }
 0x386   :  { %v2512_v53 = vadd.f32 %v2511_v11, %v2463_v42 }
 0x388   :  { %v2418_v9 = vpop.f32.mrf.mxu0  ;;  %v2467_v1 = vpop.f32.mrf.mxu1 }
 0x389   :  { %v2555_v14 = vpop.f32.mrf.mxu3  ;;  %v2419_v16 = vadd.f32 %v4181_v27, %v2418_v9 }
 0x38a   :  { %v2556_v37 = vadd.f32 %v2555_v14, %v2507_v4 }
 0x38b   :  { %v2468_v45 = vadd.f32 %v2467_v1, %v2419_v16 }
 0x38c   :  { %2582 = vst [vmem:[#allocation7 + $0x48] sm:$0xff] %v2556_v37 }
 0x38d   :  { %v2514_v59 = vpop.f32.mrf.mxu2 }
 0x38e   :  { %v2515_v24 = vadd.f32 %v2514_v59, %v2466_v63 }
 0x390   :  { %v2421_v28 = vpop.f32.mrf.mxu0  ;;  %v2470_v21 = vpop.f32.mrf.mxu1 }
 0x391   :  { %v2558_v25 = vpop.f32.mrf.mxu3  ;;  %v2422_v26 = vadd.f32 %v4181_v27, %v2421_v28 }
 0x392   :  { %v2559_v19 = vadd.f32 %v2558_v25, %v2510_v48 }
 0x393   :  { %v2471_v47 = vadd.f32 %v2470_v21, %v2422_v26 }
 0x394   :  { %2583 = vst [vmem:[#allocation7 + $0x50] sm:$0xff] %v2559_v19 }
 0x395   :  { %v2516_v60 = vpop.f32.mrf.mxu2 }
 0x396   :  { %v2517_v44 = vadd.f32 %v2516_v60, %v2468_v45 }
 0x398   :  { %v2423_v6 = vpop.f32.mrf.mxu0  ;;  %v2472_v18 = vpop.f32.mrf.mxu1 }
 0x399   :  { %v2560_v54 = vpop.f32.mrf.mxu3  ;;  %v2424_v62 = vadd.f32 %v4181_v27, %v2423_v6 }
 0x39a   :  { %v2561_v36 = vadd.f32 %v2560_v54, %v2512_v53 }
 0x39b   :  { %v2473_v52 = vadd.f32 %v2472_v18, %v2424_v62 }
 0x39c   :  { %2584 = vst [vmem:[#allocation7 + $0x58] sm:$0xff] %v2561_v36 }
 0x39d   :  { %v2519_v58 = vpop.f32.mrf.mxu2 }
 0x39e   :  { %v2520_v22 = vadd.f32 %v2519_v58, %v2471_v47 }
 0x3a1   :  { %v2563_v10 = vpop.f32.mrf.mxu3 }
 0x3a2   :  { %v2564_v17 = vadd.f32 %v2563_v10, %v2515_v24 }
 0x3a4   :  { %2585 = vst [vmem:[#allocation7 + $0x60] sm:$0xff] %v2564_v17 }
 0x3a5   :  { %v2521_v49 = vpop.f32.mrf.mxu2 }
 0x3a6   :  { %v2522_v33 = vadd.f32 %v2521_v49, %v2473_v52 }
 0x3a9   :  { %v2565_v57 = vpop.f32.mrf.mxu3 }
 0x3aa   :  { %v2566_v41 = vadd.f32 %v2565_v57, %v2517_v44 }
 0x3ac   :  { %2586 = vst [vmem:[#allocation7 + $0x68] sm:$0xff] %v2566_v41 }
 0x3b1   :  { %v2568_v15 = vpop.f32.mrf.mxu3 }
 0x3b2   :  { %v2569_v32 = vadd.f32 %v2568_v15, %v2520_v22 }
 0x3b4   :  { %2587 = vst [vmem:[#allocation7 + $0x70] sm:$0xff] %v2569_v32 }
 0x3b9   :  { %v2570_v38 = vpop.f32.mrf.mxu3 }
 0x3ba   :  { %v2571_v55 = vadd.f32 %v2570_v38, %v2522_v33 }
 0x3bc   :  { %2588 = vst [vmem:[#allocation7 + $0x78] sm:$0xff] %v2571_v55 }
 0x3bd   :  { %2601 = dma.vmem_to_hbm [thread:$0]  %s2594_s30, 2048, %s2596_s10, [#allocation4], %s3577_s11, %s3577_s11, %s3578_s12  }
 0x3be   :  { %3568 = dma.done.wait [#allocation4], 2048  }
 0x3bf   :  { %3569 = vsyncadd [#allocation4], 4294965248 }
 0x3c0   :  { %2606 = vsyncpa [#allocation3], 1 }
 0x3c1   :  { %2607 = vsyncpa [#allocation6], 1 }
 0x3c2   :  { %2608 = vsyncpa [#allocation4], 1 }

</bundles_post_ra>
